<compile_context>
chip_gen: v7x
topology: tpu7x:2x2x1
jax: 0.10.0
libtpu: 0.0.40
codegen_flags: <defaults>
</compile_context>

<pallas_src>
import jax
import jax.numpy as jnp
from jax.experimental import pallas as pl
from jax.experimental.pallas import tpu as pltpu

EMB = 128          # embedding_dimension
NUM_PROP = 6       # num_prop_size
NUM_REL = 2        # num_relations
OUT_CLASSES = 2
LANE = 128
F32 = jnp.float32
BF16 = jnp.bfloat16


def _leaky_relu(x, slope=0.01):
    return jnp.where(x > 0, x, slope * x)


def _round_up(x, m):
    return (x + m - 1) // m * m


def _safe_vmem_limit(default=48 << 20):
    # Leave headroom below physical VMEM (v7x has only 64 MiB per TensorCore).
    try:
        cap = pltpu.get_tpu_info().vmem_capacity_bytes
        return int(min(cap * 3 // 4, 100 << 20))
    except Exception:
        return default


def _compiler_params(dim_sem):
    return pltpu.CompilerParams(
        dimension_semantics=dim_sem,
        vmem_limit_bytes=_safe_vmem_limit(),
    )


# ----------------------------- kernels --------------------------------------

def fused_kernel(x_ref, adj_ref, inv_ref,
                 w_np_ref, b_np_ref, w_in_ref, b_in_ref,
                 w_rg_ref, b_rg_ref,
                 w_o1_ref, b_o1_ref, w_o2_ref, b_o2_ref,
                 o_ref):
    """Whole forward pass for graphs whose dense adjacency fits VMEM.

    Adjacency (int8 0/1) and h never leave VMEM between layers; normalization
    is one broadcasted multiply with inv_deg after each aggregation matmul.
    """
    # Input MLP: LeakyReLU(x @ W_np + b) -> LeakyReLU(. @ W_in + b)
    n1 = _leaky_relu(jnp.dot(x_ref[...].astype(BF16), w_np_ref[...],
                             preferred_element_type=F32) + b_np_ref[...])
    h = _leaky_relu(jnp.dot(n1.astype(BF16), w_in_ref[...],
                            preferred_element_type=F32) + b_in_ref[...])

    def rgcn(h_f32):
        h_bf = h_f32.astype(BF16)
        out = jnp.dot(h_bf, w_rg_ref[0], preferred_element_type=F32) + b_rg_ref[...]
        for r in range(NUM_REL):                       # static unroll
            agg = jnp.dot(adj_ref[r].astype(BF16), h_bf,
                          preferred_element_type=F32) * inv_ref[r]
            out = out + jnp.dot(agg.astype(BF16), w_rg_ref[1 + r],
                                preferred_element_type=F32)
        return out

    h = rgcn(h)
    # TODO(synk): F.dropout implemented as inference-mode identity (training=False).
    h = rgcn(h)

    y = _leaky_relu(jnp.dot(h.astype(BF16), w_o1_ref[...],
                            preferred_element_type=F32) + b_o1_ref[...])
    o_ref[...] = jnp.dot(y.astype(BF16), w_o2_ref[...],
                         preferred_element_type=F32) + b_o2_ref[...]


def input_mlp_kernel(x_ref, w_np_ref, b_np_ref, w_in_ref, b_in_ref, o_ref):
    n1 = _leaky_relu(jnp.dot(x_ref[...].astype(BF16), w_np_ref[...],
                             preferred_element_type=F32) + b_np_ref[...])
    h = _leaky_relu(jnp.dot(n1.astype(BF16), w_in_ref[...],
                            preferred_element_type=F32) + b_in_ref[...])
    o_ref[...] = h.astype(o_ref.dtype)        # bf16 store -> no separate cast op


def rgcn_tiled_kernel(adj_ref, inv_ref, h_col_ref, h_row_ref, w_rg_ref, b_rg_ref,
                      o_ref, acc_ref):
    """One RGCN layer, row-tiled over destination nodes, K-tiled over sources.

    grid = (rows, k_tiles); acc_ref [NUM_REL, tm, EMB] f32 accumulates the
    un-normalized aggregation across K; normalization + the three relation /
    root matmuls happen once at the last K step (no concat temp).
    """
    k = pl.program_id(1)

    @pl.when(k == 0)
    def _():
        acc_ref[...] = jnp.zeros_like(acc_ref)

    h_col = h_col_ref[...]                               # [tk, EMB] bf16
    for r in range(NUM_REL):                             # static unroll
        acc_ref[r] += jnp.dot(adj_ref[r].astype(BF16), h_col,
                              preferred_element_type=F32)

    @pl.when(k == pl.num_programs(1) - 1)
    def _():
        out = jnp.dot(h_row_ref[...], w_rg_ref[0],
                      preferred_element_type=F32) + b_rg_ref[...]
        for r in range(NUM_REL):
            agg = acc_ref[r] * inv_ref[r]                # mean normalization
            out = out + jnp.dot(agg.astype(BF16), w_rg_ref[1 + r],
                                preferred_element_type=F32)
        o_ref[...] = out.astype(o_ref.dtype)             # bf16 store


def output_mlp_kernel(h_ref, w_o1_ref, b_o1_ref, w_o2_ref, b_o2_ref, o_ref):
    y = _leaky_relu(jnp.dot(h_ref[...], w_o1_ref[...],
                            preferred_element_type=F32) + b_o1_ref[...])
    # Lane-dense [tm, 128] output (w_o2 zero-padded); real classes are [:, :2].
    o_ref[...] = jnp.dot(y.astype(BF16), w_o2_ref[...],
                         preferred_element_type=F32) + b_o2_ref[...]


# ----------------------------- wrappers --------------------------------------

def _fused_forward(x_pad, adj_i8, inv_deg, w):
    n = x_pad.shape[0]
    flops = int(2 * n * LANE * EMB + 2 * n * EMB * EMB
                + 2 * (2 * NUM_REL * n * n * EMB + 2 * (1 + NUM_REL) * n * EMB * EMB)
                + 2 * n * EMB * EMB + 2 * n * EMB * LANE)
    bytes_acc = int(adj_i8.size + 4 * inv_deg.size + 4 * x_pad.size
                    + 4 * n * LANE + 12 * EMB * EMB * 2)

    def full(shape):
        return pl.BlockSpec(shape, lambda i: (0,) * len(shape))

    return pl.pallas_call(
        fused_kernel,
        out_shape=jax.ShapeDtypeStruct((n, LANE), F32),
        grid=(1,),
        in_specs=[
            full((n, LANE)),                 # x_pad (f32)
            full((NUM_REL, n, n)),           # adjacency (int8, 0/1 counts)
            full((NUM_REL, n, 1)),           # inverse degree (f32)
            full((LANE, EMB)), full((1, EMB)),       # w_np_pad (bf16), b_np (f32)
            full((EMB, EMB)), full((1, EMB)),        # w_in, b_in
            full((1 + NUM_REL, EMB, EMB)), full((1, EMB)),   # [w_root; w_rel], b_rg
            full((EMB, EMB)), full((1, EMB)),        # w_o1, b_o1
            full((EMB, LANE)), full((1, LANE)),      # w_o2_pad, b_o2_pad
        ],
        out_specs=pl.BlockSpec((n, LANE), lambda i: (0, 0)),
        compiler_params=_compiler_params(("arbitrary",)),
        cost_estimate=pl.CostEstimate(flops=flops, transcendentals=0,
                                      bytes_accessed=bytes_acc),
    )(x_pad, adj_i8, inv_deg,
      w["w_np_pad"], w["b_np"], w["w_in"], w["b_in"],
      w["w_rg"], w["b_rg"], w["w_o1"], w["b_o1"], w["w_o2_pad"], w["b_o2_pad"])


def _input_mlp_tiled(x_pad, w, tm):
    n = x_pad.shape[0]
    flops = int(2 * n * LANE * EMB + 2 * n * EMB * EMB)
    bytes_acc = int(4 * x_pad.size + 2 * n * EMB + 4 * EMB * EMB)
    return pl.pallas_call(
        input_mlp_kernel,
        out_shape=jax.ShapeDtypeStruct((n, EMB), BF16),
        grid=(n // tm,),
        in_specs=[
            pl.BlockSpec((tm, LANE), lambda i: (i, 0)),
            pl.BlockSpec((LANE, EMB), lambda i: (0, 0)),
            pl.BlockSpec((1, EMB), lambda i: (0, 0)),
            pl.BlockSpec((EMB, EMB), lambda i: (0, 0)),
            pl.BlockSpec((1, EMB), lambda i: (0, 0)),
        ],
        out_specs=pl.BlockSpec((tm, EMB), lambda i: (i, 0)),
        compiler_params=_compiler_params(("parallel",)),
        cost_estimate=pl.CostEstimate(flops=flops, transcendentals=0,
                                      bytes_accessed=bytes_acc),
    )(x_pad, w["w_np_pad"], w["b_np"], w["w_in"], w["b_in"])


def _rgcn_layer_tiled(adj_i8, inv_deg, h_bf16, w, tm, tk):
    n = h_bf16.shape[0]
    rows, kt = n // tm, n // tk
    flops = int(2 * NUM_REL * n * n * EMB + 2 * n * (1 + NUM_REL) * EMB * EMB)
    bytes_acc = int(adj_i8.size + 4 * inv_deg.size
                    + (rows + 1) * n * EMB * 2 + n * EMB * 2
                    + 2 * (1 + NUM_REL) * EMB * EMB)
    return pl.pallas_call(
        rgcn_tiled_kernel,
        out_shape=jax.ShapeDtypeStruct((n, EMB), BF16),
        grid=(rows, kt),
        in_specs=[
            pl.BlockSpec((NUM_REL, tm, tk), lambda i, k: (0, i, k)),   # adjacency tile
            pl.BlockSpec((NUM_REL, tm, 1), lambda i, k: (0, i, 0)),    # inv_deg rows
            pl.BlockSpec((tk, EMB), lambda i, k: (k, 0)),              # h column view
            pl.BlockSpec((tm, EMB), lambda i, k: (i, 0)),              # h row view (root)
            pl.BlockSpec((1 + NUM_REL, EMB, EMB), lambda i, k: (0, 0, 0)),
            pl.BlockSpec((1, EMB), lambda i, k: (0, 0)),
        ],
        out_specs=pl.BlockSpec((tm, EMB), lambda i, k: (i, 0)),
        scratch_shapes=[pltpu.VMEM((NUM_REL, tm, EMB), F32)],
        compiler_params=_compiler_params(("parallel", "arbitrary")),
        cost_estimate=pl.CostEstimate(flops=flops, transcendentals=0,
                                      bytes_accessed=bytes_acc),
    )(adj_i8, inv_deg, h_bf16, h_bf16, w["w_rg"], w["b_rg"])


def _output_mlp_tiled(h_bf16, w, tm):
    n = h_bf16.shape[0]
    flops = int(2 * n * EMB * EMB + 2 * n * EMB * LANE)
    bytes_acc = int(2 * h_bf16.size + 4 * n * LANE + 4 * EMB * EMB)
    return pl.pallas_call(
        output_mlp_kernel,
        out_shape=jax.ShapeDtypeStruct((n, LANE), F32),
        grid=(n // tm,),
        in_specs=[
            pl.BlockSpec((tm, EMB), lambda i: (i, 0)),
            pl.BlockSpec((EMB, EMB), lambda i: (0, 0)),
            pl.BlockSpec((1, EMB), lambda i: (0, 0)),
            pl.BlockSpec((EMB, LANE), lambda i: (0, 0)),
            pl.BlockSpec((1, LANE), lambda i: (0, 0)),
        ],
        out_specs=pl.BlockSpec((tm, LANE), lambda i: (i, 0)),
        compiler_params=_compiler_params(("parallel",)),
        cost_estimate=pl.CostEstimate(flops=flops, transcendentals=0,
                                      bytes_accessed=bytes_acc),
    )(h_bf16, w["w_o1"], w["b_o1"], w["w_o2_pad"], w["b_o2_pad"])


# ----------------------------- glue ------------------------------------------

def build_adjacency(edge_index, edge_type, padded_nodes, num_relations):
    """Un-normalized per-relation edge-count adjacency (exact, int8) plus the
    f32 inverse in-degree used for PyG RGCNConv mean aggregation.
    Requires all edge indices < real node count (padded columns stay zero)."""
    # TODO(synk): for genuinely sparse graphs replace this dense O(N^2) form with
    # a CSR gather/segment-sum aggregation driven by PrefetchScalarGridSpec.
    src, dst = edge_index[0], edge_index[1]
    adjs, invs = [], []
    for r in range(num_relations):
        w = (edge_type == r).astype(F32)
        a = jnp.zeros((padded_nodes, padded_nodes), F32).at[dst, src].add(w)
        deg = a.sum(axis=1, keepdims=True)
        invs.append(jnp.where(deg > 0, 1.0, 0.0) / jnp.where(deg > 0, deg, 1.0))
        adjs.append(a)
    adj_i8 = jnp.stack(adjs, axis=0).astype(jnp.int8)    # exact small edge counts
    inv_deg = jnp.stack(invs, axis=0)                    # [R, N, 1] f32
    return adj_i8, inv_deg


def _prep_weights(params):
    """bf16 matmul operands (f32 accumulation in-kernel), lane-dense padding."""
    w_np_pad = (jnp.zeros((LANE, EMB), F32)
                .at[:NUM_PROP, :].set(params["w_np"]).astype(BF16))
    w_o2_pad = (jnp.zeros((EMB, LANE), F32)
                .at[:, :OUT_CLASSES].set(params["w_o2"]).astype(BF16))
    b_o2_pad = jnp.zeros((1, LANE), F32).at[:, :OUT_CLASSES].set(params["b_o2"])
    w_rg = jnp.concatenate([params["w_root"][None], params["w_rel"]],
                           axis=0).astype(BF16)          # [1+R, 128, 128]
    return {
        "w_np_pad": w_np_pad, "b_np": params["b_np"],
        "w_in": params["w_in"].astype(BF16), "b_in": params["b_in"],
        "w_rg": w_rg, "b_rg": params["b_rg"],
        "w_o1": params["w_o1"].astype(BF16), "b_o1": params["b_o1"],
        "w_o2_pad": w_o2_pad, "b_o2_pad": b_o2_pad,
    }


def _choose_k_tile(n_pad, tm, bytes_budget):
    """Largest multiple-of-128 divisor of n_pad whose double-buffered adjacency
    + h-column blocks fit the per-step VMEM budget."""
    per_col = 2 * (NUM_REL * tm + 2 * EMB)       # int8 adj + bf16 h, double-buffered
    cap = max(LANE, bytes_budget // per_col)
    if n_pad <= cap:
        return n_pad
    best = LANE
    for d in range(LANE, n_pad + 1, LANE):
        if n_pad % d == 0 and d <= cap:
            best = d
    return best


def botrgcn3_forward(des, tweet, num_prop, cat_prop, edge_index, edge_type, params,
                     *, force_tiled=False, row_tile=None, k_tile=None):
    del des, tweet, cat_prop   # unused by BotRGCN3.forward (branches commented out in spec)
    n = num_prop.shape[0]
    vmem_limit = _safe_vmem_limit()
    w = _prep_weights(params)

    # ---- small/medium graphs: single fused kernel (adjacency streamed once) ----
    n_small = _round_up(max(n, LANE), LANE)
    fused_bytes = 4 * NUM_REL * n_small * n_small + 12 * n_small * EMB * 4
    if (not force_tiled) and n_small <= 4096 and fused_bytes <= vmem_limit // 2:
        x_pad = jnp.zeros((n_small, LANE), F32).at[:n, :NUM_PROP].set(num_prop)
        adj_i8, inv_deg = build_adjacency(edge_index, edge_type, n_small, NUM_REL)
        out_pad = _fused_forward(x_pad, adj_i8, inv_deg, w)
        return out_pad[:n, :OUT_CLASSES]

    # ---- large graphs: row-parallel (both v7x TCs) + K-tiled aggregation -------
    tm = row_tile or (128 if n <= 1024 else 256)     # >=2 row tiles for mid-size N
    n_pad = _round_up(max(n, tm), tm)
    tk = k_tile or _choose_k_tile(n_pad, tm, vmem_limit // 2)
    assert n_pad % tm == 0 and n_pad % tk == 0

    x_pad = jnp.zeros((n_pad, LANE), F32).at[:n, :NUM_PROP].set(num_prop)
    adj_i8, inv_deg = build_adjacency(edge_index, edge_type, n_pad, NUM_REL)

    h = _input_mlp_tiled(x_pad, w, tm)                       # bf16 h
    h = _rgcn_layer_tiled(adj_i8, inv_deg, h, w, tm, tk)
    # TODO(synk): F.dropout implemented as inference-mode identity (training=False).
    h = _rgcn_layer_tiled(adj_i8, inv_deg, h, w, tm, tk)
    out_pad = _output_mlp_tiled(h, w, tm)
    return out_pad[:n, :OUT_CLASSES]


def botrgcn3_reference(num_prop, edge_index, edge_type, params):
    """Pure-JAX f32 reference mirroring the PyTorch forward."""
    n_nodes = num_prop.shape[0]
    src, dst = edge_index[0], edge_index[1]
    adjs = []
    for r in range(NUM_REL):
        wgt = (edge_type == r).astype(F32)
        a = jnp.zeros((n_nodes, n_nodes), F32).at[dst, src].add(wgt)
        deg = a.sum(axis=1, keepdims=True)
        adjs.append(a / jnp.where(deg > 0, deg, 1.0))

    h = _leaky_relu(num_prop @ params["w_np"] + params["b_np"])
    h = _leaky_relu(h @ params["w_in"] + params["b_in"])

    def rgcn(h):
        out = h @ params["w_root"] + params["b_rg"]
        for r in range(NUM_REL):
            out = out + (adjs[r] @ h) @ params["w_rel"][r]
        return out

    h = rgcn(h)
    h = rgcn(h)
    h = _leaky_relu(h @ params["w_o1"] + params["b_o1"])
    return h @ params["w_o2"] + params["b_o2"]


def init_params(key):
    ks = jax.random.split(key, 16)
    s = 0.05

    def lin(kw, kb, fan_in, fan_out):
        wgt = s * jax.random.normal(kw, (fan_in, fan_out), F32)
        b = s * jax.random.normal(kb, (1, fan_out), F32)
        return wgt, b

    w_np, b_np = lin(ks[0], ks[1], NUM_PROP, EMB)
    w_in, b_in = lin(ks[2], ks[3], EMB, EMB)
    w_o1, b_o1 = lin(ks[4], ks[5], EMB, EMB)
    w_o2, b_o2 = lin(ks[6], ks[7], EMB, OUT_CLASSES)
    w_rel = s * jax.random.normal(ks[8], (NUM_REL, EMB, EMB), F32)
    w_root = s * jax.random.normal(ks[9], (EMB, EMB), F32)
    b_rg = s * jax.random.normal(ks[10], (1, EMB), F32)
    return {
        "w_np": w_np, "b_np": b_np,
        "w_in": w_in, "b_in": b_in,
        "w_rel": w_rel, "w_root": w_root, "b_rg": b_rg,
        "w_o1": w_o1, "b_o1": b_o1,
        "w_o2": w_o2, "b_o2": b_o2,
    }


if __name__ == "__main__":
    key = jax.random.PRNGKey(0)
    ks = jax.random.split(key, 12)
    params = init_params(ks[0])

    # ---- small graph: exercises the fused single-kernel path -------------------
    N_NODES, N_EDGES = 128, 256
    des = jax.random.normal(ks[1], (N_NODES, 768), F32)       # unused by forward
    tweet = jax.random.normal(ks[2], (N_NODES, 768), F32)     # unused by forward
    num_prop = jax.random.normal(ks[3], (N_NODES, NUM_PROP), F32)
    cat_prop = jax.random.normal(ks[4], (N_NODES, 11), F32)   # unused by forward
    edge_index = jnp.stack([
        jax.random.randint(ks[5], (N_EDGES,), 0, N_NODES),
        jax.random.randint(ks[6], (N_EDGES,), 0, N_NODES)], axis=0)
    edge_type = jax.random.randint(ks[7], (N_EDGES,), 0, NUM_REL)

    out = jax.block_until_ready(
        botrgcn3_forward(des, tweet, num_prop, cat_prop, edge_index, edge_type, params))
    assert out.shape == (N_NODES, OUT_CLASSES)
    assert bool(jnp.all(jnp.isfinite(out)))
    ref = botrgcn3_reference(num_prop, edge_index, edge_type, params)
    err = float(jnp.max(jnp.abs(out - ref)))
    assert err < 1e-2, f"fused path mismatch vs f32 reference: max abs err {err}"

    # ---- larger graph: forces the row+K tiled path (K accumulator exercised) ---
    N2, E2 = 512, 2048
    num_prop2 = jax.random.normal(ks[8], (N2, NUM_PROP), F32)
    edge_index2 = jnp.stack([
        jax.random.randint(ks[9], (E2,), 0, N2),
        jax.random.randint(ks[10], (E2,), 0, N2)], axis=0)
    edge_type2 = jax.random.randint(ks[11], (E2,), 0, NUM_REL)

    out2 = jax.block_until_ready(
        botrgcn3_forward(None, None, num_prop2, None, edge_index2, edge_type2, params,
                         force_tiled=True, row_tile=128, k_tile=128))
    ref2 = botrgcn3_reference(num_prop2, edge_index2, edge_type2, params)
    err2 = float(jnp.max(jnp.abs(out2 - ref2)))
    assert err2 < 1e-2, f"tiled path mismatch vs f32 reference: max abs err {err2}"

    print("KERNEL_OK")
</pallas_src>

<mosaic_0001>
module attributes {stable_mosaic.version = 11 : i64} {
  func.func @fused_kernel(%arg0: i32, %arg1: memref<128x128xf32, #tpu.memory_space<vmem>>, %arg2: memref<2x128x128xi8, #tpu.memory_space<vmem>>, %arg3: memref<2x128x1xf32, #tpu.memory_space<vmem>>, %arg4: memref<128x128xbf16, #tpu.memory_space<vmem>>, %arg5: memref<1x128xf32, #tpu.memory_space<vmem>>, %arg6: memref<128x128xbf16, #tpu.memory_space<vmem>>, %arg7: memref<1x128xf32, #tpu.memory_space<vmem>>, %arg8: memref<3x128x128xbf16, #tpu.memory_space<vmem>>, %arg9: memref<1x128xf32, #tpu.memory_space<vmem>>, %arg10: memref<128x128xbf16, #tpu.memory_space<vmem>>, %arg11: memref<1x128xf32, #tpu.memory_space<vmem>>, %arg12: memref<128x128xbf16, #tpu.memory_space<vmem>>, %arg13: memref<1x128xf32, #tpu.memory_space<vmem>>, %arg14: memref<128x128xf32, #tpu.memory_space<vmem>>) attributes {dimension_semantics = [#tpu.dimension_semantics<arbitrary>], iteration_bounds = array<i64: 1>, scalar_prefetch = 0 : i64, scratch_operands = 0 : i64, tpu.core_type = #tpu.core_type<tc>, window_params = [{pipeline_mode = #tpu.pipeline_mode<synchronous>, transform_indices = @transform_0, window_bounds = array<i64: 128, 128>}, {pipeline_mode = #tpu.pipeline_mode<synchronous>, transform_indices = @transform_1, window_bounds = array<i64: 2, 128, 128>}, {pipeline_mode = #tpu.pipeline_mode<synchronous>, transform_indices = @transform_2, window_bounds = array<i64: 2, 128, 1>}, {pipeline_mode = #tpu.pipeline_mode<synchronous>, transform_indices = @transform_3, window_bounds = array<i64: 128, 128>}, {pipeline_mode = #tpu.pipeline_mode<synchronous>, transform_indices = @transform_4, window_bounds = array<i64: 1, 128>}, {pipeline_mode = #tpu.pipeline_mode<synchronous>, transform_indices = @transform_5, window_bounds = array<i64: 128, 128>}, {pipeline_mode = #tpu.pipeline_mode<synchronous>, transform_indices = @transform_6, window_bounds = array<i64: 1, 128>}, {pipeline_mode = #tpu.pipeline_mode<synchronous>, transform_indices = @transform_7, window_bounds = array<i64: 3, 128, 128>}, {pipeline_mode = #tpu.pipeline_mode<synchronous>, transform_indices = @transform_8, window_bounds = array<i64: 1, 128>}, {pipeline_mode = #tpu.pipeline_mode<synchronous>, transform_indices = @transform_9, window_bounds = array<i64: 128, 128>}, {pipeline_mode = #tpu.pipeline_mode<synchronous>, transform_indices = @transform_10, window_bounds = array<i64: 1, 128>}, {pipeline_mode = #tpu.pipeline_mode<synchronous>, transform_indices = @transform_11, window_bounds = array<i64: 128, 128>}, {pipeline_mode = #tpu.pipeline_mode<synchronous>, transform_indices = @transform_12, window_bounds = array<i64: 1, 128>}, {pipeline_mode = #tpu.pipeline_mode<synchronous>, transform_indices = @transform_13, window_bounds = array<i64: 128, 128>}]} {
    %c0 = arith.constant 0 : index
    %c0_0 = arith.constant 0 : index
    %0 = vector.load %arg1[%c0, %c0_0] : memref<128x128xf32, #tpu.memory_space<vmem>>, vector<128x128xf32>
    %1 = arith.truncf %0 : vector<128x128xf32> to vector<128x128xbf16>
    %c0_1 = arith.constant 0 : index
    %c0_2 = arith.constant 0 : index
    %2 = vector.load %arg4[%c0_1, %c0_2] : memref<128x128xbf16, #tpu.memory_space<vmem>>, vector<128x128xbf16>
    %cst = arith.constant dense<0.000000e+00> : vector<128x128xf32>
    %3 = tpu.matmul %1, %2, %cst {dimension_numbers = #tpu.dot_dimension_numbers<[1], [0], [0], [1], [0, 0, 1, 1], [], []>} : vector<128x128xbf16>, vector<128x128xbf16>, vector<128x128xf32> -> vector<128x128xf32>
    %c0_3 = arith.constant 0 : index
    %c0_4 = arith.constant 0 : index
    %4 = vector.load %arg5[%c0_3, %c0_4] : memref<1x128xf32, #tpu.memory_space<vmem>>, vector<1x128xf32>
    %5 = vector.broadcast %4 : vector<1x128xf32> to vector<128x128xf32>
    %6 = arith.addf %3, %5 : vector<128x128xf32>
    %cst_5 = arith.constant 0.000000e+00 : f32
    %7 = vector.broadcast %cst_5 : f32 to vector<128x128xf32>
    %8 = arith.cmpf ogt, %6, %7 : vector<128x128xf32>
    %cst_6 = arith.constant 0.00999999977 : f32
    %9 = vector.broadcast %cst_6 : f32 to vector<128x128xf32>
    %10 = arith.mulf %9, %6 : vector<128x128xf32>
    %11 = arith.select %8, %6, %10 : vector<128x128xi1>, vector<128x128xf32>
    %12 = arith.truncf %11 : vector<128x128xf32> to vector<128x128xbf16>
    %c0_7 = arith.constant 0 : index
    %c0_8 = arith.constant 0 : index
    %13 = vector.load %arg6[%c0_7, %c0_8] : memref<128x128xbf16, #tpu.memory_space<vmem>>, vector<128x128xbf16>
    %cst_9 = arith.constant dense<0.000000e+00> : vector<128x128xf32>
    %14 = tpu.matmul %12, %13, %cst_9 {dimension_numbers = #tpu.dot_dimension_numbers<[1], [0], [0], [1], [0, 0, 1, 1], [], []>} : vector<128x128xbf16>, vector<128x128xbf16>, vector<128x128xf32> -> vector<128x128xf32>
    %c0_10 = arith.constant 0 : index
    %c0_11 = arith.constant 0 : index
    %15 = vector.load %arg7[%c0_10, %c0_11] : memref<1x128xf32, #tpu.memory_space<vmem>>, vector<1x128xf32>
    %16 = vector.broadcast %15 : vector<1x128xf32> to vector<128x128xf32>
    %17 = arith.addf %14, %16 : vector<128x128xf32>
    %cst_12 = arith.constant 0.000000e+00 : f32
    %18 = vector.broadcast %cst_12 : f32 to vector<128x128xf32>
    %19 = arith.cmpf ogt, %17, %18 : vector<128x128xf32>
    %cst_13 = arith.constant 0.00999999977 : f32
    %20 = vector.broadcast %cst_13 : f32 to vector<128x128xf32>
    %21 = arith.mulf %20, %17 : vector<128x128xf32>
    %22 = arith.select %19, %17, %21 : vector<128x128xi1>, vector<128x128xf32>
    %23 = arith.truncf %22 : vector<128x128xf32> to vector<128x128xbf16>
    %c0_14 = arith.constant 0 : index
    %c0_15 = arith.constant 0 : index
    %c0_16 = arith.constant 0 : index
    %24 = vector.load %arg8[%c0_14, %c0_15, %c0_16] : memref<3x128x128xbf16, #tpu.memory_space<vmem>>, vector<1x128x128xbf16>
    %25 = vector.shape_cast %24 : vector<1x128x128xbf16> to vector<128x128xbf16>
    %cst_17 = arith.constant dense<0.000000e+00> : vector<128x128xf32>
    %26 = tpu.matmul %23, %25, %cst_17 {dimension_numbers = #tpu.dot_dimension_numbers<[1], [0], [0], [1], [0, 0, 1, 1], [], []>} : vector<128x128xbf16>, vector<128x128xbf16>, vector<128x128xf32> -> vector<128x128xf32>
    %c0_18 = arith.constant 0 : index
    %c0_19 = arith.constant 0 : index
    %27 = vector.load %arg9[%c0_18, %c0_19] : memref<1x128xf32, #tpu.memory_space<vmem>>, vector<1x128xf32>
    %28 = vector.broadcast %27 : vector<1x128xf32> to vector<128x128xf32>
    %29 = arith.addf %26, %28 : vector<128x128xf32>
    %c0_20 = arith.constant 0 : index
    %c0_21 = arith.constant 0 : index
    %c0_22 = arith.constant 0 : index
    %30 = vector.load %arg2[%c0_20, %c0_21, %c0_22] : memref<2x128x128xi8, #tpu.memory_space<vmem>>, vector<1x128x128xi8>
    %31 = vector.shape_cast %30 : vector<1x128x128xi8> to vector<128x128xi8>
    %32 = arith.sitofp %31 : vector<128x128xi8> to vector<128x128xbf16>
    %cst_23 = arith.constant dense<0.000000e+00> : vector<128x128xf32>
    %33 = tpu.matmul %32, %23, %cst_23 {dimension_numbers = #tpu.dot_dimension_numbers<[1], [0], [0], [1], [0, 0, 1, 1], [], []>} : vector<128x128xbf16>, vector<128x128xbf16>, vector<128x128xf32> -> vector<128x128xf32>
    %c0_24 = arith.constant 0 : index
    %c0_25 = arith.constant 0 : index
    %c0_26 = arith.constant 0 : index
    %34 = vector.load %arg3[%c0_24, %c0_25, %c0_26] : memref<2x128x1xf32, #tpu.memory_space<vmem>>, vector<1x128x1xf32>
    %35 = vector.shape_cast %34 : vector<1x128x1xf32> to vector<128x1xf32>
    %36 = vector.broadcast %35 : vector<128x1xf32> to vector<128x128xf32>
    %37 = arith.mulf %33, %36 : vector<128x128xf32>
    %38 = arith.truncf %37 : vector<128x128xf32> to vector<128x128xbf16>
    %c1 = arith.constant 1 : index
    %c0_27 = arith.constant 0 : index
    %c0_28 = arith.constant 0 : index
    %39 = vector.load %arg8[%c1, %c0_27, %c0_28] : memref<3x128x128xbf16, #tpu.memory_space<vmem>>, vector<1x128x128xbf16>
    %40 = vector.shape_cast %39 : vector<1x128x128xbf16> to vector<128x128xbf16>
    %cst_29 = arith.constant dense<0.000000e+00> : vector<128x128xf32>
    %41 = tpu.matmul %38, %40, %cst_29 {dimension_numbers = #tpu.dot_dimension_numbers<[1], [0], [0], [1], [0, 0, 1, 1], [], []>} : vector<128x128xbf16>, vector<128x128xbf16>, vector<128x128xf32> -> vector<128x128xf32>
    %42 = arith.addf %29, %41 : vector<128x128xf32>
    %c1_30 = arith.constant 1 : index
    %c0_31 = arith.constant 0 : index
    %c0_32 = arith.constant 0 : index
    %43 = vector.load %arg2[%c1_30, %c0_31, %c0_32] : memref<2x128x128xi8, #tpu.memory_space<vmem>>, vector<1x128x128xi8>
    %44 = vector.shape_cast %43 : vector<1x128x128xi8> to vector<128x128xi8>
    %45 = arith.sitofp %44 : vector<128x128xi8> to vector<128x128xbf16>
    %cst_33 = arith.constant dense<0.000000e+00> : vector<128x128xf32>
    %46 = tpu.matmul %45, %23, %cst_33 {dimension_numbers = #tpu.dot_dimension_numbers<[1], [0], [0], [1], [0, 0, 1, 1], [], []>} : vector<128x128xbf16>, vector<128x128xbf16>, vector<128x128xf32> -> vector<128x128xf32>
    %c1_34 = arith.constant 1 : index
    %c0_35 = arith.constant 0 : index
    %c0_36 = arith.constant 0 : index
    %47 = vector.load %arg3[%c1_34, %c0_35, %c0_36] : memref<2x128x1xf32, #tpu.memory_space<vmem>>, vector<1x128x1xf32>
    %48 = vector.shape_cast %47 : vector<1x128x1xf32> to vector<128x1xf32>
    %49 = vector.broadcast %48 : vector<128x1xf32> to vector<128x128xf32>
    %50 = arith.mulf %46, %49 : vector<128x128xf32>
    %51 = arith.truncf %50 : vector<128x128xf32> to vector<128x128xbf16>
    %c2 = arith.constant 2 : index
    %c0_37 = arith.constant 0 : index
    %c0_38 = arith.constant 0 : index
    %52 = vector.load %arg8[%c2, %c0_37, %c0_38] : memref<3x128x128xbf16, #tpu.memory_space<vmem>>, vector<1x128x128xbf16>
    %53 = vector.shape_cast %52 : vector<1x128x128xbf16> to vector<128x128xbf16>
    %cst_39 = arith.constant dense<0.000000e+00> : vector<128x128xf32>
    %54 = tpu.matmul %51, %53, %cst_39 {dimension_numbers = #tpu.dot_dimension_numbers<[1], [0], [0], [1], [0, 0, 1, 1], [], []>} : vector<128x128xbf16>, vector<128x128xbf16>, vector<128x128xf32> -> vector<128x128xf32>
    %55 = arith.addf %42, %54 : vector<128x128xf32>
    %56 = arith.truncf %55 : vector<128x128xf32> to vector<128x128xbf16>
    %c0_40 = arith.constant 0 : index
    %c0_41 = arith.constant 0 : index
    %c0_42 = arith.constant 0 : index
    %57 = vector.load %arg8[%c0_40, %c0_41, %c0_42] : memref<3x128x128xbf16, #tpu.memory_space<vmem>>, vector<1x128x128xbf16>
    %58 = vector.shape_cast %57 : vector<1x128x128xbf16> to vector<128x128xbf16>
    %cst_43 = arith.constant dense<0.000000e+00> : vector<128x128xf32>
    %59 = tpu.matmul %56, %58, %cst_43 {dimension_numbers = #tpu.dot_dimension_numbers<[1], [0], [0], [1], [0, 0, 1, 1], [], []>} : vector<128x128xbf16>, vector<128x128xbf16>, vector<128x128xf32> -> vector<128x128xf32>
    %c0_44 = arith.constant 0 : index
    %c0_45 = arith.constant 0 : index
    %60 = vector.load %arg9[%c0_44, %c0_45] : memref<1x128xf32, #tpu.memory_space<vmem>>, vector<1x128xf32>
    %61 = vector.broadcast %60 : vector<1x128xf32> to vector<128x128xf32>
    %62 = arith.addf %59, %61 : vector<128x128xf32>
    %c0_46 = arith.constant 0 : index
    %c0_47 = arith.constant 0 : index
    %c0_48 = arith.constant 0 : index
    %63 = vector.load %arg2[%c0_46, %c0_47, %c0_48] : memref<2x128x128xi8, #tpu.memory_space<vmem>>, vector<1x128x128xi8>
    %64 = vector.shape_cast %63 : vector<1x128x128xi8> to vector<128x128xi8>
    %65 = arith.sitofp %64 : vector<128x128xi8> to vector<128x128xbf16>
    %cst_49 = arith.constant dense<0.000000e+00> : vector<128x128xf32>
    %66 = tpu.matmul %65, %56, %cst_49 {dimension_numbers = #tpu.dot_dimension_numbers<[1], [0], [0], [1], [0, 0, 1, 1], [], []>} : vector<128x128xbf16>, vector<128x128xbf16>, vector<128x128xf32> -> vector<128x128xf32>
    %c0_50 = arith.constant 0 : index
    %c0_51 = arith.constant 0 : index
    %c0_52 = arith.constant 0 : index
    %67 = vector.load %arg3[%c0_50, %c0_51, %c0_52] : memref<2x128x1xf32, #tpu.memory_space<vmem>>, vector<1x128x1xf32>
    %68 = vector.shape_cast %67 : vector<1x128x1xf32> to vector<128x1xf32>
    %69 = vector.broadcast %68 : vector<128x1xf32> to vector<128x128xf32>
    %70 = arith.mulf %66, %69 : vector<128x128xf32>
    %71 = arith.truncf %70 : vector<128x128xf32> to vector<128x128xbf16>
    %c1_53 = arith.constant 1 : index
    %c0_54 = arith.constant 0 : index
    %c0_55 = arith.constant 0 : index
    %72 = vector.load %arg8[%c1_53, %c0_54, %c0_55] : memref<3x128x128xbf16, #tpu.memory_space<vmem>>, vector<1x128x128xbf16>
    %73 = vector.shape_cast %72 : vector<1x128x128xbf16> to vector<128x128xbf16>
    %cst_56 = arith.constant dense<0.000000e+00> : vector<128x128xf32>
    %74 = tpu.matmul %71, %73, %cst_56 {dimension_numbers = #tpu.dot_dimension_numbers<[1], [0], [0], [1], [0, 0, 1, 1], [], []>} : vector<128x128xbf16>, vector<128x128xbf16>, vector<128x128xf32> -> vector<128x128xf32>
    %75 = arith.addf %62, %74 : vector<128x128xf32>
    %c1_57 = arith.constant 1 : index
    %c0_58 = arith.constant 0 : index
    %c0_59 = arith.constant 0 : index
    %76 = vector.load %arg2[%c1_57, %c0_58, %c0_59] : memref<2x128x128xi8, #tpu.memory_space<vmem>>, vector<1x128x128xi8>
    %77 = vector.shape_cast %76 : vector<1x128x128xi8> to vector<128x128xi8>
    %78 = arith.sitofp %77 : vector<128x128xi8> to vector<128x128xbf16>
    %cst_60 = arith.constant dense<0.000000e+00> : vector<128x128xf32>
    %79 = tpu.matmul %78, %56, %cst_60 {dimension_numbers = #tpu.dot_dimension_numbers<[1], [0], [0], [1], [0, 0, 1, 1], [], []>} : vector<128x128xbf16>, vector<128x128xbf16>, vector<128x128xf32> -> vector<128x128xf32>
    %c1_61 = arith.constant 1 : index
    %c0_62 = arith.constant 0 : index
    %c0_63 = arith.constant 0 : index
    %80 = vector.load %arg3[%c1_61, %c0_62, %c0_63] : memref<2x128x1xf32, #tpu.memory_space<vmem>>, vector<1x128x1xf32>
    %81 = vector.shape_cast %80 : vector<1x128x1xf32> to vector<128x1xf32>
    %82 = vector.broadcast %81 : vector<128x1xf32> to vector<128x128xf32>
    %83 = arith.mulf %79, %82 : vector<128x128xf32>
    %84 = arith.truncf %83 : vector<128x128xf32> to vector<128x128xbf16>
    %c2_64 = arith.constant 2 : index
    %c0_65 = arith.constant 0 : index
    %c0_66 = arith.constant 0 : index
    %85 = vector.load %arg8[%c2_64, %c0_65, %c0_66] : memref<3x128x128xbf16, #tpu.memory_space<vmem>>, vector<1x128x128xbf16>
    %86 = vector.shape_cast %85 : vector<1x128x128xbf16> to vector<128x128xbf16>
    %cst_67 = arith.constant dense<0.000000e+00> : vector<128x128xf32>
    %87 = tpu.matmul %84, %86, %cst_67 {dimension_numbers = #tpu.dot_dimension_numbers<[1], [0], [0], [1], [0, 0, 1, 1], [], []>} : vector<128x128xbf16>, vector<128x128xbf16>, vector<128x128xf32> -> vector<128x128xf32>
    %88 = arith.addf %75, %87 : vector<128x128xf32>
    %89 = arith.truncf %88 : vector<128x128xf32> to vector<128x128xbf16>
    %c0_68 = arith.constant 0 : index
    %c0_69 = arith.constant 0 : index
    %90 = vector.load %arg10[%c0_68, %c0_69] : memref<128x128xbf16, #tpu.memory_space<vmem>>, vector<128x128xbf16>
    %cst_70 = arith.constant dense<0.000000e+00> : vector<128x128xf32>
    %91 = tpu.matmul %89, %90, %cst_70 {dimension_numbers = #tpu.dot_dimension_numbers<[1], [0], [0], [1], [0, 0, 1, 1], [], []>} : vector<128x128xbf16>, vector<128x128xbf16>, vector<128x128xf32> -> vector<128x128xf32>
    %c0_71 = arith.constant 0 : index
    %c0_72 = arith.constant 0 : index
    %92 = vector.load %arg11[%c0_71, %c0_72] : memref<1x128xf32, #tpu.memory_space<vmem>>, vector<1x128xf32>
    %93 = vector.broadcast %92 : vector<1x128xf32> to vector<128x128xf32>
    %94 = arith.addf %91, %93 : vector<128x128xf32>
    %cst_73 = arith.constant 0.000000e+00 : f32
    %95 = vector.broadcast %cst_73 : f32 to vector<128x128xf32>
    %96 = arith.cmpf ogt, %94, %95 : vector<128x128xf32>
    %cst_74 = arith.constant 0.00999999977 : f32
    %97 = vector.broadcast %cst_74 : f32 to vector<128x128xf32>
    %98 = arith.mulf %97, %94 : vector<128x128xf32>
    %99 = arith.select %96, %94, %98 : vector<128x128xi1>, vector<128x128xf32>
    %100 = arith.truncf %99 : vector<128x128xf32> to vector<128x128xbf16>
    %c0_75 = arith.constant 0 : index
    %c0_76 = arith.constant 0 : index
    %101 = vector.load %arg12[%c0_75, %c0_76] : memref<128x128xbf16, #tpu.memory_space<vmem>>, vector<128x128xbf16>
    %cst_77 = arith.constant dense<0.000000e+00> : vector<128x128xf32>
    %102 = tpu.matmul %100, %101, %cst_77 {dimension_numbers = #tpu.dot_dimension_numbers<[1], [0], [0], [1], [0, 0, 1, 1], [], []>} : vector<128x128xbf16>, vector<128x128xbf16>, vector<128x128xf32> -> vector<128x128xf32>
    %c0_78 = arith.constant 0 : index
    %c0_79 = arith.constant 0 : index
    %103 = vector.load %arg13[%c0_78, %c0_79] : memref<1x128xf32, #tpu.memory_space<vmem>>, vector<1x128xf32>
    %104 = vector.broadcast %103 : vector<1x128xf32> to vector<128x128xf32>
    %105 = arith.addf %102, %104 : vector<128x128xf32>
    %c0_80 = arith.constant 0 : index
    %c0_81 = arith.constant 0 : index
    %106 = vector.load %arg14[%c0_80, %c0_81] : memref<128x128xf32, #tpu.memory_space<vmem>>, vector<128x128xf32>
    tpu.vector_store %arg14[%c0_80, %c0_81], %105 {strides = array<i32>} : memref<128x128xf32, #tpu.memory_space<vmem>>, vector<128x128xf32>,
    return
  }
  func.func @transform_0(%arg0: i32) -> (i32, i32) {
    %c0_i32 = arith.constant 0 : i32
    %c0_i32_0 = arith.constant 0 : i32
    %c0_i32_1 = arith.constant 0 : i32
    return %c0_i32, %c0_i32_0 : i32, i32
  }
  func.func @transform_1(%arg0: i32) -> (i32, i32, i32) {
    %c0_i32 = arith.constant 0 : i32
    %c0_i32_0 = arith.constant 0 : i32
    %c0_i32_1 = arith.constant 0 : i32
    %c0_i32_2 = arith.constant 0 : i32
    return %c0_i32, %c0_i32_0, %c0_i32_1 : i32, i32, i32
  }
  func.func @transform_2(%arg0: i32) -> (i32, i32, i32) {
    %c0_i32 = arith.constant 0 : i32
    %c0_i32_0 = arith.constant 0 : i32
    %c0_i32_1 = arith.constant 0 : i32
    %c0_i32_2 = arith.constant 0 : i32
    return %c0_i32, %c0_i32_0, %c0_i32_1 : i32, i32, i32
  }
  func.func @transform_3(%arg0: i32) -> (i32, i32) {
    %c0_i32 = arith.constant 0 : i32
    %c0_i32_0 = arith.constant 0 : i32
    %c0_i32_1 = arith.constant 0 : i32
    return %c0_i32, %c0_i32_0 : i32, i32
  }
  func.func @transform_4(%arg0: i32) -> (i32, i32) {
    %c0_i32 = arith.constant 0 : i32
    %c0_i32_0 = arith.constant 0 : i32
    %c0_i32_1 = arith.constant 0 : i32
    return %c0_i32, %c0_i32_0 : i32, i32
  }
  func.func @transform_5(%arg0: i32) -> (i32, i32) {
    %c0_i32 = arith.constant 0 : i32
    %c0_i32_0 = arith.constant 0 : i32
    %c0_i32_1 = arith.constant 0 : i32
    return %c0_i32, %c0_i32_0 : i32, i32
  }
  func.func @transform_6(%arg0: i32) -> (i32, i32) {
    %c0_i32 = arith.constant 0 : i32
    %c0_i32_0 = arith.constant 0 : i32
    %c0_i32_1 = arith.constant 0 : i32
    return %c0_i32, %c0_i32_0 : i32, i32
  }
  func.func @transform_7(%arg0: i32) -> (i32, i32, i32) {
    %c0_i32 = arith.constant 0 : i32
    %c0_i32_0 = arith.constant 0 : i32
    %c0_i32_1 = arith.constant 0 : i32
    %c0_i32_2 = arith.constant 0 : i32
    return %c0_i32, %c0_i32_0, %c0_i32_1 : i32, i32, i32
  }
  func.func @transform_8(%arg0: i32) -> (i32, i32) {
    %c0_i32 = arith.constant 0 : i32
    %c0_i32_0 = arith.constant 0 : i32
    %c0_i32_1 = arith.constant 0 : i32
    return %c0_i32, %c0_i32_0 : i32, i32
  }
  func.func @transform_9(%arg0: i32) -> (i32, i32) {
    %c0_i32 = arith.constant 0 : i32
    %c0_i32_0 = arith.constant 0 : i32
    %c0_i32_1 = arith.constant 0 : i32
    return %c0_i32, %c0_i32_0 : i32, i32
  }
  func.func @transform_10(%arg0: i32) -> (i32, i32) {
    %c0_i32 = arith.constant 0 : i32
    %c0_i32_0 = arith.constant 0 : i32
    %c0_i32_1 = arith.constant 0 : i32
    return %c0_i32, %c0_i32_0 : i32, i32
  }
  func.func @transform_11(%arg0: i32) -> (i32, i32) {
    %c0_i32 = arith.constant 0 : i32
    %c0_i32_0 = arith.constant 0 : i32
    %c0_i32_1 = arith.constant 0 : i32
    return %c0_i32, %c0_i32_0 : i32, i32
  }
  func.func @transform_12(%arg0: i32) -> (i32, i32) {
    %c0_i32 = arith.constant 0 : i32
    %c0_i32_0 = arith.constant 0 : i32
    %c0_i32_1 = arith.constant 0 : i32
    return %c0_i32, %c0_i32_0 : i32, i32
  }
  func.func @transform_13(%arg0: i32) -> (i32, i32) {
    %c0_i32 = arith.constant 0 : i32
    %c0_i32_0 = arith.constant 0 : i32
    %c0_i32_1 = arith.constant 0 : i32
    return %c0_i32, %c0_i32_0 : i32, i32
  }
}

</mosaic_0001>

<bundles_post_ra>
// kernel: tpu_custom_call.1
= control target key start
LH: loop header
LB: loop body
LE: loop exit
PB: predicated region body
PF: predicated region fallthrough
CT: control target
= control target key end

     0   :  { %18 = vsyncpa [#allocation3], 0  ;;  %s4558_s0 = inlined_call_operand.hbm [shape: f32[128,128], index: 0, kind: input, shape index: {}]   ;;  %s4559_s1 = inlined_call_operand.vmem [shape: s8[2,128,128], index: 1, kind: input, shape index: {}]   ;;  %s4560_s2 = inlined_call_operand.vmem [shape: f32[2,128,1], index: 2, kind: input, shape index: {}]   ;;  %s4561_s3 = inlined_call_operand.hbm [shape: bf16[128,128], index: 3, kind: input, shape index: {}]   ;;  %s4562_s4 = inlined_call_operand.vmem [shape: f32[1,128], index: 4, kind: input, shape index: {}]   ;;  %s4563_s5 = inlined_call_operand.hbm [shape: bf16[128,128], index: 5, kind: input, shape index: {}]   ;;  %s4564_s6 = inlined_call_operand.vmem [shape: f32[1,128], index: 6, kind: input, shape index: {}]   ;;  %s4565_s7 = inlined_call_operand.vmem [shape: bf16[3,128,128], index: 7, kind: input, shape index: {}]   ;;  %s4566_s8 = inlined_call_operand.vmem [shape: f32[1,128], index: 8, kind: input, shape index: {}]   ;;  %s4567_s9 = inlined_call_operand.hbm [shape: bf16[128,128], index: 9, kind: input, shape index: {}]   ;;  %s4568_s10 = inlined_call_operand.vmem [shape: f32[1,128], index: 10, kind: input, shape index: {}]   ;;  %s4569_s11 = inlined_call_operand.hbm [shape: bf16[128,128], index: 11, kind: input, shape index: {}]   ;;  %s4570_s12 = inlined_call_operand.vmem [shape: f32[1,128], index: 12, kind: input, shape index: {}]   ;;  %s4571_s13 = inlined_call_operand.hbm [shape: f32[128,128], index: 13, kind: output, shape index: {}]  }
   0x1   :  { %19 = vsyncpa [#allocation6], 0 }
   0x2   :  { %20 = vsyncpa [#allocation9], 0 }
   0x3   :  { %21 = vsyncpa [#allocation4], 0  ;;  %s3668_s25 = smov [#allocation5]   ;;  %s3528_s29 = scalar_lea.hbm %s4561_s3, 1024 }
   0x4   :  { %s43_s26 = sshll.u32 %s3668_s25, 4  ;;  %p3529_p0 = scmp.ne.s32.totalorder %s4561_s3, %s3528_s29  ;;  %s44_s26 = int_to_ptr.vmem [resolvable:$true] %s43_s26 }
   0x5   :  { %p3532_p1 = scmp.lt.u32.totalorder %s3528_s29, %s4561_s3 }
   0x7   :  { %p3534_p2 = pnand %p3532_p1, %p3529_p0 }
   0x9   :  { %3537 = shalt.err (!%p3534_p2)
}
   0xa   :  { %s3538_s17 = scalar_lea.vmem %s44_s26, 1024  ;;  %p3543_p4 = scmp.lt.s32.totalorder %s44_s26, %s44_s26 }
   0xb   :  { %p3539_p3 = scmp.ne.s32.totalorder %s44_s26, %s3538_s17  ;;  %p3544_p5 = scmp.lt.s32.totalorder %s3538_s17, %s3538_s17 }
   0xd   :  { %p3545_p6 = por %p3544_p5, %p3543_p4 }
   0xf   :  { %p3546_p7 = pnand %p3545_p6, %p3539_p3 }
  0x11   :  { %3549 = shalt.err (!%p3546_p7)
}
  0x12   :  { %s3669_s18 = smov 64   ;;  %s3670_s19 = smov 4  }
  0x13   :  { %49 = dma.hbm_to_vmem [thread:$0]  %s4561_s3, 1024, %s44_s26, [#allocation6], %s3669_s18, %s3669_s18, %s3670_s19  }
  0x14   :  { %s3671_s22 = smov [#allocation8]   ;;  %s3672_s24 = smov [#allocation2]  }
  0x15   :  { %s75_s23 = sshll.u32 %s3671_s22, 4  ;;  %s27_s25 = sshll.u32 %s3672_s24, 4  ;;  %s76_s23 = int_to_ptr.vmem [resolvable:$true] %s75_s23  ;;  %s28_s25 = int_to_ptr.vmem [resolvable:$true] %s27_s25 }
  0x16   :  { %s3550_s29 = scalar_lea.hbm %s4567_s9, 1024 }
  0x17   :  { %p3551_p8 = scmp.ne.s32.totalorder %s4567_s9, %s3550_s29  ;;  %p3554_p9 = scmp.lt.u32.totalorder %s3550_s29, %s4567_s9 }
  0x19   :  { %p3556_p10 = pnand %p3554_p9, %p3551_p8 }
  0x1b   :  { %3559 = shalt.err (!%p3556_p10)
}
  0x1c   :  { %s3560_s3 = scalar_lea.vmem %s76_s23, 1024  ;;  %p3565_p12 = scmp.lt.s32.totalorder %s76_s23, %s76_s23 }
  0x1d   :  { %p3561_p11 = scmp.ne.s32.totalorder %s76_s23, %s3560_s3  ;;  %p3566_p13 = scmp.lt.s32.totalorder %s3560_s3, %s3560_s3 }
  0x1f   :  { %p3567_p0 = por %p3566_p13, %p3565_p12 }
  0x21   :  { %p3568_p1 = pnand %p3567_p0, %p3561_p11 }
  0x23   :  { %3571 = shalt.err (!%p3568_p1)
}
  0x24   :  { %81 = dma.hbm_to_vmem [thread:$0]  %s4567_s9, 1024, %s76_s23, [#allocation9], %s3669_s18, %s3669_s18, %s3670_s19  }
  0x25   :  { %s3572_s22 = scalar_lea.hbm %s4558_s0, 2048 }
  0x26   :  { %p3573_p2 = scmp.ne.s32.totalorder %s4558_s0, %s3572_s22  ;;  %p3576_p3 = scmp.lt.u32.totalorder %s3572_s22, %s4558_s0 }
  0x28   :  { %p3578_p4 = pnand %p3576_p3, %p3573_p2 }
  0x2a   :  { %3581 = shalt.err (!%p3578_p4)
}
  0x2b   :  { %s3582_s30 = scalar_lea.vmem %s28_s25, 2048  ;;  %p3587_p6 = scmp.lt.s32.totalorder %s28_s25, %s28_s25 }
  0x2c   :  { %p3583_p5 = scmp.ne.s32.totalorder %s28_s25, %s3582_s30  ;;  %p3588_p7 = scmp.lt.s32.totalorder %s3582_s30, %s3582_s30 }
  0x2e   :  { %p3589_p8 = por %p3588_p7, %p3587_p6 }
  0x30   :  { %p3590_p9 = pnand %p3589_p8, %p3583_p5 }
  0x32   :  { %3593 = shalt.err (!%p3590_p9)
}
  0x33   :  { %s3673_s9 = smov 128   ;;  %s3674_s23 = smov 8  }
  0x34   :  { %33 = dma.hbm_to_vmem [thread:$0]  %s4558_s0, 2048, %s28_s25, [#allocation3], %s3673_s9, %s3673_s9, %s3674_s23  }
  0x35   :  { %s3675_s16 = smov [#allocation7]   ;;  %s3676_s26 = smov [#allocation10]  }
  0x36   :  { %s57_s3 = sshll.u32 %s3675_s16, 4  ;;  %s89_s17 = sshll.u32 %s3676_s26, 4  ;;  %s58_s3 = int_to_ptr.vmem [resolvable:$true] %s57_s3  ;;  %s90_s17 = int_to_ptr.vmem [resolvable:$true] %s89_s17 }
  0x37   :  { %s3594_s22 = scalar_lea.hbm %s4563_s5, 1024 }
  0x38   :  { %p3595_p10 = scmp.ne.s32.totalorder %s4563_s5, %s3594_s22  ;;  %p3598_p11 = scmp.lt.u32.totalorder %s3594_s22, %s4563_s5 }
  0x3a   :  { %p3600_p12 = pnand %p3598_p11, %p3595_p10 }
  0x3c   :  { %3603 = shalt.err (!%p3600_p12)
}
  0x3d   :  { %s3604_s0 = scalar_lea.vmem %s58_s3, 1024  ;;  %p3609_p0 = scmp.lt.s32.totalorder %s58_s3, %s58_s3 }
  0x3e   :  { %p3605_p13 = scmp.ne.s32.totalorder %s58_s3, %s3604_s0  ;;  %p3610_p1 = scmp.lt.s32.totalorder %s3604_s0, %s3604_s0 }
  0x40   :  { %p3611_p2 = por %p3610_p1, %p3609_p0 }
  0x42   :  { %p3612_p3 = pnand %p3611_p2, %p3605_p13 }
  0x44   :  { %3615 = shalt.err (!%p3612_p3)
}
  0x45   :  { %63 = dma.hbm_to_vmem [thread:$0]  %s4563_s5, 1024, %s58_s3, [#allocation6], %s3669_s18, %s3669_s18, %s3670_s19  }
  0x46   :  { %s3616_s16 = scalar_lea.hbm %s4569_s11, 1024 }
  0x47   :  { %p3617_p4 = scmp.ne.s32.totalorder %s4569_s11, %s3616_s16  ;;  %p3620_p5 = scmp.lt.u32.totalorder %s3616_s16, %s4569_s11 }
  0x49   :  { %p3622_p6 = pnand %p3620_p5, %p3617_p4 }
  0x4b   :  { %3625 = shalt.err (!%p3622_p6)
}
  0x4c   :  { %s3626_s24 = scalar_lea.vmem %s90_s17, 1024  ;;  %p3631_p8 = scmp.lt.s32.totalorder %s90_s17, %s90_s17 }
  0x4d   :  { %p3627_p7 = scmp.ne.s32.totalorder %s90_s17, %s3626_s24  ;;  %p3632_p9 = scmp.lt.s32.totalorder %s3626_s24, %s3626_s24 }
  0x4f   :  { %p3633_p10 = por %p3632_p9, %p3631_p8 }
  0x51   :  { %p3634_p11 = pnand %p3633_p10, %p3627_p7 }
  0x53   :  { %3637 = shalt.err (!%p3634_p11)
}
  0x54   :  { %95 = dma.hbm_to_vmem [thread:$0]  %s4569_s11, 1024, %s90_s17, [#allocation9], %s3669_s18, %s3669_s18, %s3670_s19  }
  0x55   :  { %3660 = dma.done.wait [#allocation3], 2048  }
  0x56   :  { %3661 = vsyncadd [#allocation3], 4294965248 }
  0x57   :  { %3662 = dma.done.wait [#allocation6], 2048  }
  0x58   :  { %3663 = vsyncadd [#allocation6], 4294965248 }
  0x59   :  { %3664 = dma.done.wait [#allocation9], 2048  }
  0x5a   :  { %3665 = vsyncadd [#allocation9], 4294965248  ;;  %v3472_v0 = vld [vmem:[#allocation5] sm:$0xff]   ;;  %v3473_v1 = vld [vmem:[#allocation5 + $0x8] sm:$0xff]  }
  0x5b   :  { %2915 = vmatprep.subr.bf16.mxu0 %v3472_v0  ;;  %v3474_v2 = vld [vmem:[#allocation5 + $0x10] sm:$0xff]   ;;  %v3475_v3 = vld [vmem:[#allocation5 + $0x18] sm:$0xff]   ;;  %v114_v4 = vld [vmem:[#allocation2] sm:$0xff] }
  0x5c   :  { %2916 = vmatpush3.bf16.msra.mxu0 %v3472_v0  ;;  %v115_v5 = vld [vmem:[#allocation2 + $0x8] sm:$0xff]  ;;  %v3476_v7 = vld [vmem:[#allocation5 + $0x20] sm:$0xff]   ;;  %v3478_v11 = vld [vmem:[#allocation5 + $0x30] sm:$0xff]  }
  0x5d   :  { %2917 = vmatprep.subr.bf16.mxu0 %v3473_v1  ;;  %v130_v6 = vpack.c.bf16 %v115_v5, %v114_v4  ;;  %v3480_v8 = vld [vmem:[#allocation7] sm:$0xff]   ;;  %v3481_v9 = vld [vmem:[#allocation7 + $0x8] sm:$0xff]   ;;  %v3482_v12 = vld [vmem:[#allocation7 + $0x10] sm:$0xff]  }
  0x5e   :  { %v3477_v10 = vld [vmem:[#allocation5 + $0x28] sm:$0xff]   ;;  %2947 = vmatprep.subr.bf16.mxu1 %v3480_v8  ;;  %v3483_v13 = vld [vmem:[#allocation7 + $0x18] sm:$0xff]   ;;  %v3484_v15 = vld [vmem:[#allocation7 + $0x20] sm:$0xff]  }
  0x5f   :  { %2931 = vmatprep.mubr.bf16.mxu0 %v130_v6  ;;  %2948 = vmatpush3.bf16.msra.mxu1 %v3480_v8  ;;  %v3479_v14 = vld [vmem:[#allocation5 + $0x38] sm:$0xff]   ;;  %v116_v16 = vld [vmem:[#allocation2 + $0x10] sm:$0xff]  ;;  %v118_v18 = vld [vmem:[#allocation2 + $0x20] sm:$0xff] }
  0x60   :  { %2918 = vmatpush3.bf16.msra.mxu0 %v3473_v1  ;;  %2949 = vmatprep.subr.bf16.mxu1 %v3481_v9  ;;  %v117_v17 = vld [vmem:[#allocation2 + $0x18] sm:$0xff]  ;;  %v119_v19 = vld [vmem:[#allocation2 + $0x28] sm:$0xff]  ;;  %v120_v22 = vld [vmem:[#allocation2 + $0x30] sm:$0xff] }
  0x61   :  { %2919 = vmatprep.subr.bf16.mxu0 %v3474_v2  ;;  %v131_v20 = vpack.c.bf16 %v117_v17, %v116_v16  ;;  %v132_v21 = vpack.c.bf16 %v119_v19, %v118_v18  ;;  %v121_v23 = vld [vmem:[#allocation2 + $0x38] sm:$0xff]  ;;  %v122_v24 = vld [vmem:[#allocation2 + $0x40] sm:$0xff]  ;;  %v123_v25 = vld [vmem:[#allocation2 + $0x48] sm:$0xff] }
  0x62   :  { %v133_v26 = vpack.c.bf16 %v121_v23, %v120_v22  ;;  %v134_v27 = vpack.c.bf16 %v123_v25, %v122_v24  ;;  %v124_v28 = vld [vmem:[#allocation2 + $0x50] sm:$0xff]  ;;  %v125_v29 = vld [vmem:[#allocation2 + $0x58] sm:$0xff]  ;;  %v126_v30 = vld [vmem:[#allocation2 + $0x60] sm:$0xff] }
  0x63   :  { %2950 = vmatpush3.bf16.msra.mxu1 %v3481_v9  ;;  %v127_v31 = vld [vmem:[#allocation2 + $0x68] sm:$0xff]  ;;  %v135_v32 = vpack.c.bf16 %v125_v29, %v124_v28  ;;  %v128_v34 = vld [vmem:[#allocation2 + $0x70] sm:$0xff]  ;;  %v129_v35 = vld [vmem:[#allocation2 + $0x78] sm:$0xff] }
  0x64   :  { %2920 = vmatpush3.bf16.msra.mxu0 %v3474_v2  ;;  %2951 = vmatprep.subr.bf16.mxu1 %v3482_v12  ;;  %v136_v33 = vpack.c.bf16 %v127_v31, %v126_v30  ;;  %v137_v36 = vpack.c.bf16 %v129_v35, %v128_v34  ;;  %v3485_v37 = vld [vmem:[#allocation7 + $0x28] sm:$0xff]   ;;  %v3486_v38 = vld [vmem:[#allocation7 + $0x30] sm:$0xff]   ;;  %v3487_v39 = vld [vmem:[#allocation7 + $0x38] sm:$0xff]  }
  0x65   :  { %2921 = vmatprep.subr.bf16.mxu0 %v3475_v3  ;;  %v3827_v40 = vld [vmem:[%s4565_s7] sm:$0xff]   ;;  %v3832_v41 = vld [vmem:[%s4565_s7 + $0x8] sm:$0xff]   ;;  %v3840_v42 = vld [vmem:[%s4565_s7 + $0x10] sm:$0xff]  }
  0x66   :  { %v3847_v43 = vld [vmem:[%s4565_s7 + $0x18] sm:$0xff]   ;;  %v3854_v44 = vld [vmem:[%s4565_s7 + $0x20] sm:$0xff]  }
  0x67   :  { %2952 = vmatpush3.bf16.msra.mxu1 %v3482_v12  ;;  %v3862_v45 = vld [vmem:[%s4562_s4] ss:$0 sm:$0xff] }
  0x68   :  { %2922 = vmatpush3.bf16.msra.mxu0 %v3475_v3  ;;  %2953 = vmatprep.subr.bf16.mxu1 %v3483_v13 }
  0x69   :  { %2923 = vmatprep.subr.bf16.mxu0 %v3476_v7 }
  0x6b   :  { %2954 = vmatpush3.bf16.msra.mxu1 %v3483_v13 }
  0x6c   :  { %2924 = vmatpush3.bf16.msra.mxu0 %v3476_v7  ;;  %2955 = vmatprep.subr.bf16.mxu1 %v3484_v15 }
  0x6d   :  { %2925 = vmatprep.subr.bf16.mxu0 %v3477_v10 }
  0x6f   :  { %2956 = vmatpush3.bf16.msra.mxu1 %v3484_v15 }
  0x70   :  { %2926 = vmatpush3.bf16.msra.mxu0 %v3477_v10  ;;  %2957 = vmatprep.subr.bf16.mxu1 %v3485_v37 }
  0x71   :  { %2927 = vmatprep.subr.bf16.mxu0 %v3478_v11 }
  0x73   :  { %2958 = vmatpush3.bf16.msra.mxu1 %v3485_v37 }
  0x74   :  { %2928 = vmatpush3.bf16.msra.mxu0 %v3478_v11  ;;  %2959 = vmatprep.subr.bf16.mxu1 %v3486_v38 }
  0x75   :  { %2929 = vmatprep.subr.bf16.mxu0 %v3479_v14 }
  0x77   :  { %2960 = vmatpush3.bf16.msra.mxu1 %v3486_v38 }
  0x78   :  { %2930 = vmatpush3.bf16.msra.mxu0 %v3479_v14  ;;  %2961 = vmatprep.subr.bf16.mxu1 %v3487_v39 }
  0x79   :  { %2979 = vmatprep.subr.bf16.mxu0 %v3827_v40 }
  0x7b   :  { %2932 = vmatmul.mubr.bf16.vlgmr.msra.gmra.mrb[0].mxu0 %v131_v20  ;;  %2962 = vmatpush3.bf16.msra.mxu1 %v3487_v39 }
  0x7c   :  { %2935 = vmatprep.mubr.bf16.mxu0 %v132_v21  ;;  %2980 = vmatpush3.bf16.msra.mxu0 %v3827_v40 }
  0x7d   :  { %2981 = vmatprep.subr.bf16.mxu0 %v3832_v41 }
  0x80   :  { %2982 = vmatpush3.bf16.msra.mxu0 %v3832_v41 }
  0x81   :  { %2983 = vmatprep.subr.bf16.mxu0 %v3840_v42 }
  0x83   :  { %2936 = vmatmul.mubr.bf16.gmra.mrb[4].mxu0 %v133_v26 }
  0x84   :  { %2939 = vmatprep.mubr.bf16.mxu0 %v134_v27  ;;  %2984 = vmatpush3.bf16.msra.mxu0 %v3840_v42 }
  0x85   :  { %2985 = vmatprep.subr.bf16.mxu0 %v3847_v43 }
  0x88   :  { %2986 = vmatpush3.bf16.msra.mxu0 %v3847_v43 }
  0x89   :  { %2987 = vmatprep.subr.bf16.mxu0 %v3854_v44 }
  0x8b   :  { %2940 = vmatmul.mubr.bf16.gmra.mrb[8].mxu0 %v135_v32 }
  0x8c   :  { %2943 = vmatprep.mubr.bf16.mxu0 %v136_v33  ;;  %2988 = vmatpush3.bf16.msra.mxu0 %v3854_v44 }
  0x93   :  { %2944 = vmatmul.mubr.bf16.gmra.mrb[12].mxu0 %v137_v36 }
 0x14e   :  { %v2933_v46 = vpop.f32.mrb[0].mxu0 }
 0x14f   :  { %v252_v47 = vadd.f32 %v2933_v46, %v3862_v45  ;;  %v243_v48 = vpop.f32.mrb[1].mxu0 }
 0x150   :  { %v244_v49 = vadd.f32 %v3862_v45, %v243_v48  ;;  %v2934_v50 = vpop.f32.mrb[2].mxu0 }
 0x151   :  { %v324_v51 = vmul.f32 0.01, %v252_v47  ;;  %v255_v52 = vadd.f32 %v2934_v50, %v3862_v45  ;;  %v246_v53 = vpop.f32.mrb[3].mxu0  ;;  %vm308_vm0 = vcmp.gt.f32.partialorder %v252_v47, 0.0 }
 0x152   :  { %v322_v54 = vmul.f32 0.01, %v244_v49  ;;  %v247_v55 = vadd.f32 %v3862_v45, %v246_v53  ;;  %vm306_vm2 = vcmp.gt.f32.partialorder %v244_v49, 0.0 }
 0x153   :  { %vm309_vm1 = vcmp.gt.f32.partialorder %v255_v52, 0.0  ;;  %v325_v56 = vmul.f32 0.01, %v255_v52  ;;  %v340_v58 = vsel %vm308_vm0, %v252_v47, %v324_v51 }
 0x154   :  { %v323_v57 = vmul.f32 0.01, %v247_v55  ;;  %vm307_vm3 = vcmp.gt.f32.partialorder %v247_v55, 0.0  ;;  %v338_v61 = vsel %vm306_vm2, %v244_v49, %v322_v54 }
 0x155   :  { %v341_v59 = vsel %vm309_vm1, %v255_v52, %v325_v56 }
 0x156   :  { %v2937_v60 = vpop.f32.mrb[4].mxu0  ;;  %v339_v62 = vsel %vm307_vm3, %v247_v55, %v323_v57  ;;  %v355_v63 = vpack.c.bf16 %v341_v59, %v340_v58 }
 0x157   :  { %v268_v0 = vadd.f32 %v2937_v60, %v3862_v45  ;;  %v259_v1 = vpop.f32.mrb[5].mxu0  ;;  %v354_v2 = vpack.c.bf16 %v339_v62, %v338_v61  ;;  %v3883_v60 = vld [vmem:[%s4565_s7 + $0x28] sm:$0xff]   ;;  %v3897_v61 = vld [vmem:[%s4565_s7 + $0x38] sm:$0xff]   ;;  %v3904_v62 = vld [vmem:[%s4559_s1] sm:$0xff] }
 0x158   :  { %v260_v3 = vadd.f32 %v3862_v45, %v259_v1  ;;  %v2938_v4 = vpop.f32.mrb[6].mxu0  ;;  %2989 = vmatprep.subr.bf16.mxu0 %v3883_v60  ;;  %v863_v1 = vld [vmem:[%s4560_s2] sm:$0xff] }
 0x159   :  { %v328_v5 = vmul.f32 0.01, %v268_v0  ;;  %v271_v6 = vadd.f32 %v2938_v4, %v3862_v45  ;;  %v262_v7 = vpop.f32.mrb[7].mxu0  ;;  %2963 = vmatprep.mubr.bf16.mxu1 %v354_v2  ;;  %vm312_vm4 = vcmp.gt.f32.partialorder %v268_v0, 0.0  ;;  %2990 = vmatpush3.bf16.msra.mxu0 %v3883_v60  ;;  %v865_v2 = vld [vmem:[%s4560_s2 + $0x10] sm:$0xff]  ;;  %v866_v4 = vld [vmem:[%s4560_s2 + $0x18] sm:$0xff] }
 0x15a   :  { %v326_v8 = vmul.f32 0.01, %v260_v3  ;;  %v263_v9 = vadd.f32 %v3862_v45, %v262_v7  ;;  %2964 = vmatmul.mubr.bf16.vlgmr.msra.gmra.mrb[0].mxu1 %v355_v63  ;;  %vm310_vm5 = vcmp.gt.f32.partialorder %v260_v3, 0.0  ;;  %v4587_v63 = vunpack.c.l.s8.bf16 %v3904_v62  ;;  %v869_v7 = vld [vmem:[%s4560_s2 + $0x30] sm:$0xff] }
 0x15b   :  { %vm313_vm6 = vcmp.gt.f32.partialorder %v271_v6, 0.0  ;;  %v329_v10 = vmul.f32 0.01, %v271_v6  ;;  %v344_v12 = vsel %vm312_vm4, %v268_v0, %v328_v5  ;;  %v3677_v0 = vmov 0   ;;  %v867_v5 = vld [vmem:[%s4560_s2 + $0x20] sm:$0xff] }
 0x15c   :  { %vm311_vm7 = vcmp.gt.f32.partialorder %v263_v9, 0.0  ;;  %v327_v11 = vmul.f32 0.01, %v263_v9  ;;  %v342_v15 = vsel %vm310_vm5, %v260_v3, %v326_v8  ;;  %3470 = vset.pattern.permute.xlu0 %v3677_v0  ;;  %3471 = vset.pattern.permute.xlu1 %v3677_v0  ;;  %v864_v3 = vld [vmem:[%s4560_s2 + $0x8] sm:$0xff]  ;;  %v870_v8 = vld [vmem:[%s4560_s2 + $0x38] sm:$0xff] }
 0x15d   :  { %v345_v13 = vsel %vm313_vm6, %v271_v6, %v329_v10  ;;  %881 = vperm.xlu0 %3470, %v863_v1   ;;  %891 = vperm.xlu1 %3471, %v865_v2   ;;  %v868_v6 = vld [vmem:[%s4560_s2 + $0x28] sm:$0xff] }
 0x15e   :  { %v2941_v14 = vpop.f32.mrb[8].mxu0  ;;  %v343_v16 = vsel %vm311_vm7, %v263_v9, %v327_v11  ;;  %v357_v17 = vpack.c.bf16 %v345_v13, %v344_v12  ;;  %v871_v9 = vld [vmem:[%s4560_s2 + $0x40] sm:$0xff]  ;;  %v872_v10 = vld [vmem:[%s4560_s2 + $0x48] sm:$0xff]  ;;  %v873_v11 = vld [vmem:[%s4560_s2 + $0x50] sm:$0xff] }
 0x15f   :  { %v284_v18 = vadd.f32 %v2941_v14, %v3862_v45  ;;  %v275_v19 = vpop.f32.mrb[9].mxu0  ;;  %v356_v20 = vpack.c.bf16 %v343_v16, %v342_v15  ;;  %v874_v12 = vld [vmem:[%s4560_s2 + $0x58] sm:$0xff]  ;;  %v875_v13 = vld [vmem:[%s4560_s2 + $0x60] sm:$0xff]  ;;  %v876_v14 = vld [vmem:[%s4560_s2 + $0x68] sm:$0xff] }
 0x160   :  { %v276_v21 = vadd.f32 %v3862_v45, %v275_v19  ;;  %v2942_v22 = vpop.f32.mrb[10].mxu0  ;;  %v877_v15 = vld [vmem:[%s4560_s2 + $0x70] sm:$0xff]  ;;  %v878_v16 = vld [vmem:[%s4560_s2 + $0x78] sm:$0xff] }
 0x161   :  { %v332_v23 = vmul.f32 0.01, %v284_v18  ;;  %v287_v24 = vadd.f32 %v2942_v22, %v3862_v45  ;;  %v278_v25 = vpop.f32.mrb[11].mxu0  ;;  %2967 = vmatprep.mubr.bf16.mxu1 %v356_v20  ;;  %vm316_vm8 = vcmp.gt.f32.partialorder %v284_v18, 0.0  ;;  %886 = vperm.xlu0 %3470, %v864_v3   ;;  %v2635_v19 = vld [vmem:[%s4560_s2 + $0x90] sm:$0xff]  ;;  %v2636_v20 = vld [vmem:[%s4560_s2 + $0x98] sm:$0xff] }
 0x162   :  { %v330_v26 = vmul.f32 0.01, %v276_v21  ;;  %v279_v27 = vadd.f32 %v3862_v45, %v278_v25  ;;  %2968 = vmatmul.mubr.bf16.gmra.mrb[4].mxu1 %v357_v17  ;;  %vm314_vm9 = vcmp.gt.f32.partialorder %v276_v21, 0.0  ;;  %896 = vperm.xlu1 %3471, %v866_v4   ;;  %v2633_v17 = vld [vmem:[%s4560_s2 + $0x80] sm:$0xff]  ;;  %v2638_v22 = vld [vmem:[%s4560_s2 + $0xa8] sm:$0xff]  ;;  %v2640_v25 = vld [vmem:[%s4560_s2 + $0xb8] sm:$0xff] }
 0x163   :  { %vm317_vm10 = vcmp.gt.f32.partialorder %v287_v24, 0.0  ;;  %v333_v28 = vmul.f32 0.01, %v287_v24  ;;  %v348_v30 = vsel %vm316_vm8, %v284_v18, %v332_v23  ;;  %v2634_v18 = vld [vmem:[%s4560_s2 + $0x88] sm:$0xff]  ;;  %v3978_v23 = vld [vmem:[%s4565_s7 + $0x40] sm:$0xff]  }
 0x164   :  { %vm315_vm11 = vcmp.gt.f32.partialorder %v279_v27, 0.0  ;;  %v331_v29 = vmul.f32 0.01, %v279_v27  ;;  %v346_v33 = vsel %vm314_vm9, %v276_v21, %v330_v26  ;;  %v2637_v21 = vld [vmem:[%s4560_s2 + $0xa0] sm:$0xff]  ;;  %v4029_v4 = vld [vmem:[%s4565_s7 + $0x48] sm:$0xff]  }
 0x165   :  { %v349_v31 = vsel %vm317_vm10, %v287_v24, %v333_v28  ;;  %901 = vperm.xlu0 %3470, %v867_v5   ;;  %v2639_v24 = vld [vmem:[%s4560_s2 + $0xb0] sm:$0xff]  ;;  %v2641_v26 = vld [vmem:[%s4560_s2 + $0xc0] sm:$0xff] }
 0x166   :  { %v2945_v32 = vpop.f32.mrb[12].mxu0  ;;  %v347_v34 = vsel %vm315_vm11, %v279_v27, %v331_v29  ;;  %v359_v35 = vpack.c.bf16 %v349_v31, %v348_v30  ;;  %906 = vperm.xlu1 %3471, %v868_v6   ;;  %v2642_v27 = vld [vmem:[%s4560_s2 + $0xc8] sm:$0xff]  ;;  %v2643_v28 = vld [vmem:[%s4560_s2 + $0xd0] sm:$0xff]  ;;  %v2644_v29 = vld [vmem:[%s4560_s2 + $0xd8] sm:$0xff] }
 0x167   :  { %v300_v36 = vadd.f32 %v2945_v32, %v3862_v45  ;;  %v291_v37 = vpop.f32.mrb[13].mxu0  ;;  %v358_v38 = vpack.c.bf16 %v347_v34, %v346_v33  ;;  %v2645_v30 = vld [vmem:[%s4560_s2 + $0xe0] sm:$0xff]  ;;  %v2646_v31 = vld [vmem:[%s4560_s2 + $0xe8] sm:$0xff]  ;;  %v2647_v32 = vld [vmem:[%s4560_s2 + $0xf0] sm:$0xff] }
 0x168   :  { %v292_v39 = vadd.f32 %v3862_v45, %v291_v37  ;;  %v2946_v46 = vpop.f32.mrb[14].mxu0  ;;  %v2648_v33 = vld [vmem:[%s4560_s2 + $0xf8] sm:$0xff]  ;;  %v4014_v34 = vld [vmem:[%s4564_s6] ss:$0 sm:$0xff] }
 0x169   :  { %v336_v47 = vmul.f32 0.01, %v300_v36  ;;  %v303_v48 = vadd.f32 %v2946_v46, %v3862_v45  ;;  %v294_v49 = vpop.f32.mrb[15].mxu0  ;;  %2971 = vmatprep.mubr.bf16.mxu1 %v358_v38  ;;  %vm320_vm12 = vcmp.gt.f32.partialorder %v300_v36, 0.0  ;;  %911 = vperm.xlu0 %3470, %v869_v7  }
 0x16a   :  { %v334_v50 = vmul.f32 0.01, %v292_v39  ;;  %v295_v51 = vadd.f32 %v3862_v45, %v294_v49  ;;  %2972 = vmatmul.mubr.bf16.gmra.mrb[8].mxu1 %v359_v35  ;;  %vm318_vm13 = vcmp.gt.f32.partialorder %v292_v39, 0.0  ;;  %v3890_v45 = vld [vmem:[%s4565_s7 + $0x30] sm:$0xff]   ;;  %916 = vperm.xlu1 %3471, %v870_v8  }
 0x16b   :  { %vm321_vm14 = vcmp.gt.f32.partialorder %v303_v48, 0.0  ;;  %v337_v52 = vmul.f32 0.01, %v303_v48  ;;  %v352_v54 = vsel %vm320_vm12, %v300_v36, %v336_v47  ;;  %2991 = vmatprep.subr.bf16.mxu0 %v3890_v45 }
 0x16c   :  { %vm319_vm15 = vcmp.gt.f32.partialorder %v295_v51, 0.0  ;;  %v335_v53 = vmul.f32 0.01, %v295_v51  ;;  %v350_v56 = vsel %vm318_vm13, %v292_v39, %v334_v50  ;;  %2992 = vmatpush3.bf16.msra.mxu0 %v3890_v45 }
 0x16d   :  { %v353_v55 = vsel %vm321_vm14, %v303_v48, %v337_v52  ;;  %2993 = vmatprep.subr.bf16.mxu0 %v3897_v61  ;;  %921 = vperm.xlu0 %3470, %v871_v9  }
 0x16e   :  { %v351_v57 = vsel %vm319_vm15, %v295_v51, %v335_v53  ;;  %v361_v58 = vpack.c.bf16 %v353_v55, %v352_v54  ;;  %926 = vperm.xlu1 %3471, %v872_v10  }
 0x16f   :  { %v360_v59 = vpack.c.bf16 %v351_v57, %v350_v56 }
 0x170   :  { %2994 = vmatpush3.bf16.msra.mxu0 %v3897_v61 }
 0x171   :  { %2975 = vmatprep.mubr.bf16.mxu1 %v360_v59  ;;  %931 = vperm.xlu0 %3470, %v873_v11  }
 0x172   :  { %2976 = vmatmul.mubr.bf16.gmra.mrb[12].mxu1 %v361_v58  ;;  %936 = vperm.xlu1 %3471, %v874_v12   ;;  %v4043_v12 = vld [vmem:[%s4565_s7 + $0x50] sm:$0xff]  }
 0x173   :  { %3027 = vmatprep.mubr.bf16.mxu1 %v4587_v63  ;;  %3043 = vmatprep.subr.bf16.mxu0 %v3978_v23 }
 0x175   :  { %941 = vperm.xlu0 %3470, %v875_v13  }
 0x176   :  { %946 = vperm.xlu1 %3471, %v876_v14  }
 0x179   :  { %951 = vperm.xlu0 %3470, %v877_v15  }
 0x17a   :  { %956 = vperm.xlu1 %3471, %v878_v16  }
 0x17d   :  { %1290 = vperm.xlu0 %3470, %v2633_v17  }
 0x17e   :  { %1295 = vperm.xlu1 %3471, %v2634_v18  }
 0x181   :  { %1300 = vperm.xlu0 %3470, %v2635_v19  }
 0x182   :  { %1305 = vperm.xlu1 %3471, %v2636_v20  }
 0x185   :  { %1310 = vperm.xlu0 %3470, %v2637_v21  }
 0x186   :  { %1315 = vperm.xlu1 %3471, %v2638_v22  }
 0x189   :  { %1320 = vperm.xlu0 %3470, %v2639_v24  }
 0x18a   :  { %1325 = vperm.xlu1 %3471, %v2640_v25   ;;  %v4057_v25 = vld [vmem:[%s4565_s7 + $0x58] sm:$0xff]  }
 0x18d   :  { %1330 = vperm.xlu0 %3470, %v2641_v26  }
 0x18e   :  { %1335 = vperm.xlu1 %3471, %v2642_v27  }
 0x191   :  { %1340 = vperm.xlu0 %3470, %v2643_v28  }
 0x192   :  { %1345 = vperm.xlu1 %3471, %v2644_v29  }
 0x195   :  { %1350 = vperm.xlu0 %3470, %v2645_v30  }
 0x196   :  { %1355 = vperm.xlu1 %3471, %v2646_v31  }
 0x199   :  { %1360 = vperm.xlu0 %3470, %v2647_v32  }
 0x19a   :  { %1365 = vperm.xlu1 %3471, %v2648_v33   ;;  %v4071_v33 = vld [vmem:[%s4565_s7 + $0x60] sm:$0xff]  }
 0x22d   :  { %v2965_v35 = vpop.f32.mrb[0].mxu1 }
 0x22e   :  { %v476_v36 = vadd.f32 %v2965_v35, %v4014_v34  ;;  %v467_v37 = vpop.f32.mrb[1].mxu1 }
 0x22f   :  { %v468_v38 = vadd.f32 %v4014_v34, %v467_v37  ;;  %v2966_v39 = vpop.f32.mrb[2].mxu1 }
 0x230   :  { %v548_v46 = vmul.f32 0.01, %v476_v36  ;;  %v479_v47 = vadd.f32 %v2966_v39, %v4014_v34  ;;  %v470_v48 = vpop.f32.mrb[3].mxu1  ;;  %vm532_vm0 = vcmp.gt.f32.partialorder %v476_v36, 0.0 }
 0x231   :  { %v546_v49 = vmul.f32 0.01, %v468_v38  ;;  %v471_v50 = vadd.f32 %v4014_v34, %v470_v48  ;;  %vm530_vm1 = vcmp.gt.f32.partialorder %v468_v38, 0.0 }
 0x232   :  { %vm533_vm2 = vcmp.gt.f32.partialorder %v479_v47, 0.0  ;;  %v549_v51 = vmul.f32 0.01, %v479_v47  ;;  %v564_v53 = vsel %vm532_vm0, %v476_v36, %v548_v46 }
 0x233   :  { %vm531_vm3 = vcmp.gt.f32.partialorder %v471_v50, 0.0  ;;  %v547_v52 = vmul.f32 0.01, %v471_v50  ;;  %v562_v55 = vsel %vm530_vm1, %v468_v38, %v546_v49 }
 0x234   :  { %v565_v54 = vsel %vm533_vm2, %v479_v47, %v549_v51 }
 0x235   :  { %v4020_v56 = vpack.c.bf16 %v565_v54, %v564_v53  ;;  %v563_v57 = vsel %vm531_vm3, %v471_v50, %v547_v52  ;;  %v2969_v58 = vpop.f32.mrb[4].mxu1  ;;  %v4083_v52 = vld [vmem:[%s4565_s7 + $0x68] sm:$0xff]  }
 0x236   :  { %v4022_v59 = vpack.c.bf16 %v563_v57, %v562_v55  ;;  %v492_v0 = vadd.f32 %v2969_v58, %v4014_v34  ;;  %v483_v1 = vpop.f32.mrb[5].mxu1 }
 0x237   :  { %v484_v2 = vadd.f32 %v4014_v34, %v483_v1  ;;  %v2970_v3 = vpop.f32.mrb[6].mxu1 }
 0x238   :  { %v552_v5 = vmul.f32 0.01, %v492_v0  ;;  %v495_v6 = vadd.f32 %v2970_v3, %v4014_v34  ;;  %v486_v7 = vpop.f32.mrb[7].mxu1  ;;  %2995 = vmatprep.mubr.bf16.mxu0 %v4022_v59  ;;  %3011 = vmatprep.subr.bf16.mxu1 %v4022_v59  ;;  %vm536_vm4 = vcmp.gt.f32.partialorder %v492_v0, 0.0 }
 0x239   :  { %v550_v8 = vmul.f32 0.01, %v484_v2  ;;  %v487_v9 = vadd.f32 %v4014_v34, %v486_v7  ;;  %2996 = vmatmul.mubr.bf16.vlgmr.msra.gmra.mrb[16].mxu0 %v4020_v56  ;;  %3012 = vmatpush3.bf16.msra.mxu1 %v4022_v59  ;;  %vm534_vm5 = vcmp.gt.f32.partialorder %v484_v2, 0.0 }
 0x23a   :  { %vm537_vm6 = vcmp.gt.f32.partialorder %v495_v6, 0.0  ;;  %v553_v10 = vmul.f32 0.01, %v495_v6  ;;  %3013 = vmatprep.subr.bf16.mxu1 %v4020_v56  ;;  %3044 = vmatpush3.bf16.msra.mxu0 %v3978_v23  ;;  %v568_v13 = vsel %vm536_vm4, %v492_v0, %v552_v5 }
 0x23b   :  { %vm535_vm7 = vcmp.gt.f32.partialorder %v487_v9, 0.0  ;;  %v551_v11 = vmul.f32 0.01, %v487_v9  ;;  %3045 = vmatprep.subr.bf16.mxu0 %v4029_v4  ;;  %v566_v15 = vsel %vm534_vm5, %v484_v2, %v550_v8  ;;  %v4096_v8 = vld [vmem:[%s4559_s1 + $0x8] sm:$0xff] }
 0x23c   :  { %v569_v14 = vsel %vm537_vm6, %v495_v6, %v553_v10  ;;  %v4585_v10 = vunpack.c.l.s8.bf16 %v4096_v8 }
 0x23d   :  { %v4045_v16 = vpack.c.bf16 %v569_v14, %v568_v13  ;;  %v567_v17 = vsel %vm535_vm7, %v487_v9, %v551_v11  ;;  %v2973_v18 = vpop.f32.mrb[8].mxu1  ;;  %3014 = vmatpush3.bf16.msra.mxu1 %v4020_v56  ;;  %v4586_v9 = vunpack.c.h.s8.bf16 %v3904_v62  ;;  %v4110_v11 = vld [vmem:[%s4559_s1 + $0x10] sm:$0xff]  ;;  %v4584_v13 = vunpack.c.h.s8.bf16 %v4096_v8 }
 0x23e   :  { %v4048_v19 = vpack.c.bf16 %v567_v17, %v566_v15  ;;  %v508_v20 = vadd.f32 %v2973_v18, %v4014_v34  ;;  %v499_v21 = vpop.f32.mrb[9].mxu1  ;;  %3046 = vmatpush3.bf16.msra.mxu0 %v4029_v4  ;;  %v4583_v14 = vunpack.c.l.s8.bf16 %v4110_v11  ;;  %v4138_v17 = vld [vmem:[%s4559_s1 + $0x20] sm:$0xff] }
 0x23f   :  { %v500_v22 = vadd.f32 %v4014_v34, %v499_v21  ;;  %v2974_v24 = vpop.f32.mrb[10].mxu1  ;;  %3047 = vmatprep.subr.bf16.mxu0 %v4043_v12 }
 0x240   :  { %v556_v26 = vmul.f32 0.01, %v508_v20  ;;  %v511_v27 = vadd.f32 %v2974_v24, %v4014_v34  ;;  %v502_v28 = vpop.f32.mrb[11].mxu1  ;;  %2999 = vmatprep.mubr.bf16.mxu0 %v4048_v19  ;;  %3015 = vmatprep.subr.bf16.mxu1 %v4048_v19  ;;  %vm540_vm8 = vcmp.gt.f32.partialorder %v508_v20, 0.0 }
 0x241   :  { %v554_v29 = vmul.f32 0.01, %v500_v22  ;;  %v503_v30 = vadd.f32 %v4014_v34, %v502_v28  ;;  %3000 = vmatmul.mubr.bf16.gmra.mrb[20].mxu0 %v4045_v16  ;;  %3016 = vmatpush3.bf16.msra.mxu1 %v4048_v19  ;;  %vm538_vm9 = vcmp.gt.f32.partialorder %v500_v22, 0.0 }
 0x242   :  { %vm541_vm10 = vcmp.gt.f32.partialorder %v511_v27, 0.0  ;;  %v557_v31 = vmul.f32 0.01, %v511_v27  ;;  %3017 = vmatprep.subr.bf16.mxu1 %v4045_v16  ;;  %3048 = vmatpush3.bf16.msra.mxu0 %v4043_v12  ;;  %v572_v35 = vsel %vm540_vm8, %v508_v20, %v556_v26  ;;  %v4578_v20 = vunpack.c.h.s8.bf16 %v4138_v17 }
 0x243   :  { %vm539_vm11 = vcmp.gt.f32.partialorder %v503_v30, 0.0  ;;  %v555_v32 = vmul.f32 0.01, %v503_v30  ;;  %3049 = vmatprep.subr.bf16.mxu0 %v4057_v25  ;;  %v570_v37 = vsel %vm538_vm9, %v500_v22, %v554_v29  ;;  %v4163_v22 = vld [vmem:[%s4559_s1 + $0x30] sm:$0xff] }
 0x244   :  { %v573_v36 = vsel %vm541_vm10, %v511_v27, %v557_v31  ;;  %v4575_v26 = vunpack.c.l.s8.bf16 %v4163_v22  ;;  %v4574_v27 = vunpack.c.h.s8.bf16 %v4163_v22 }
 0x245   :  { %v4073_v38 = vpack.c.bf16 %v573_v36, %v572_v35  ;;  %v571_v39 = vsel %vm539_vm11, %v503_v30, %v555_v32  ;;  %v2977_v46 = vpop.f32.mrb[12].mxu1  ;;  %3018 = vmatpush3.bf16.msra.mxu1 %v4045_v16 }
 0x246   :  { %v582_v47 = vpack.c.bf16 %v571_v39, %v570_v37  ;;  %v524_v48 = vadd.f32 %v2977_v46, %v4014_v34  ;;  %v515_v49 = vpop.f32.mrb[13].mxu1  ;;  %3050 = vmatpush3.bf16.msra.mxu0 %v4057_v25 }
 0x247   :  { %v516_v50 = vadd.f32 %v4014_v34, %v515_v49  ;;  %v2978_v51 = vpop.f32.mrb[14].mxu1  ;;  %3051 = vmatprep.subr.bf16.mxu0 %v4071_v33 }
 0x248   :  { %v560_v53 = vmul.f32 0.01, %v524_v48  ;;  %v527_v54 = vadd.f32 %v2978_v51, %v4014_v34  ;;  %v518_v55 = vpop.f32.mrb[15].mxu1  ;;  %3003 = vmatprep.mubr.bf16.mxu0 %v582_v47  ;;  %3019 = vmatprep.subr.bf16.mxu1 %v582_v47  ;;  %vm544_vm12 = vcmp.gt.f32.partialorder %v524_v48, 0.0 }
 0x249   :  { %v558_v57 = vmul.f32 0.01, %v516_v50  ;;  %v519_v58 = vadd.f32 %v4014_v34, %v518_v55  ;;  %3004 = vmatmul.mubr.bf16.gmra.mrb[24].mxu0 %v4073_v38  ;;  %3020 = vmatpush3.bf16.msra.mxu1 %v582_v47  ;;  %vm542_vm13 = vcmp.gt.f32.partialorder %v516_v50, 0.0 }
 0x24a   :  { %vm545_vm14 = vcmp.gt.f32.partialorder %v527_v54, 0.0  ;;  %v561_v0 = vmul.f32 0.01, %v527_v54  ;;  %3021 = vmatprep.subr.bf16.mxu1 %v4073_v38  ;;  %3052 = vmatpush3.bf16.msra.mxu0 %v4071_v33  ;;  %v576_v2 = vsel %vm544_vm12, %v524_v48, %v560_v53 }
 0x24b   :  { %vm543_vm15 = vcmp.gt.f32.partialorder %v519_v58, 0.0  ;;  %v559_v1 = vmul.f32 0.01, %v519_v58  ;;  %3053 = vmatprep.subr.bf16.mxu0 %v4083_v52  ;;  %v574_v5 = vsel %vm542_vm13, %v516_v50, %v558_v57 }
 0x24c   :  { %v577_v3 = vsel %vm545_vm14, %v527_v54, %v561_v0 }
 0x24d   :  { %v585_v6 = vpack.c.bf16 %v577_v3, %v576_v2  ;;  %v575_v7 = vsel %vm543_vm15, %v519_v58, %v559_v1  ;;  %3022 = vmatpush3.bf16.msra.mxu1 %v4073_v38  ;;  %v4255_v1 = vld [vmem:[%s4565_s7 + $0x88] sm:$0xff]  }
 0x24e   :  { %v584_v34 = vpack.c.bf16 %v575_v7, %v574_v5  ;;  %3054 = vmatpush3.bf16.msra.mxu0 %v4083_v52 }
 0x250   :  { %3007 = vmatprep.mubr.bf16.mxu0 %v584_v34  ;;  %3023 = vmatprep.subr.bf16.mxu1 %v584_v34 }
 0x251   :  { %3008 = vmatmul.mubr.bf16.gmra.mrb[28].mxu0 %v585_v6  ;;  %3024 = vmatpush3.bf16.msra.mxu1 %v584_v34 }
 0x252   :  { %3025 = vmatprep.subr.bf16.mxu1 %v585_v6 }
 0x255   :  { %3026 = vmatpush3.bf16.msra.mxu1 %v585_v6 }
 0x256   :  { %3075 = vmatprep.subr.bf16.mxu1 %v4022_v59 }
 0x258   :  { %3028 = vmatmul.mubr.bf16.vlgmr.msra.gmra.mrb[16].mxu1 %v4586_v9 }
 0x259   :  { %3076 = vmatpush3.bf16.msra.mxu1 %v4022_v59  ;;  %3031 = vmatprep.mubr.bf16.mxu1 %v4585_v10  ;;  %v4125_v59 = vld [vmem:[%s4559_s1 + $0x18] sm:$0xff] }
 0x25a   :  { %3077 = vmatprep.subr.bf16.mxu1 %v4020_v56  ;;  %v4581_v15 = vunpack.c.l.s8.bf16 %v4125_v59  ;;  %v4580_v18 = vunpack.c.h.s8.bf16 %v4125_v59 }
 0x25d   :  { %3078 = vmatpush3.bf16.msra.mxu1 %v4020_v56  ;;  %v4582_v56 = vunpack.c.h.s8.bf16 %v4110_v11 }
 0x25e   :  { %3079 = vmatprep.subr.bf16.mxu1 %v4048_v19 }
 0x260   :  { %3032 = vmatmul.mubr.bf16.gmra.mrb[20].mxu1 %v4584_v13 }
 0x261   :  { %3080 = vmatpush3.bf16.msra.mxu1 %v4048_v19  ;;  %3035 = vmatprep.mubr.bf16.mxu1 %v4583_v14  ;;  %v4150_v19 = vld [vmem:[%s4559_s1 + $0x28] sm:$0xff] }
 0x262   :  { %3081 = vmatprep.subr.bf16.mxu1 %v4045_v16  ;;  %v4577_v21 = vunpack.c.l.s8.bf16 %v4150_v19  ;;  %v4576_v24 = vunpack.c.h.s8.bf16 %v4150_v19 }
 0x265   :  { %3082 = vmatpush3.bf16.msra.mxu1 %v4045_v16  ;;  %v4579_v16 = vunpack.c.l.s8.bf16 %v4138_v17 }
 0x266   :  { %3083 = vmatprep.subr.bf16.mxu1 %v582_v47 }
 0x268   :  { %3036 = vmatmul.mubr.bf16.gmra.mrb[24].mxu1 %v4582_v56 }
 0x269   :  { %3084 = vmatpush3.bf16.msra.mxu1 %v582_v47  ;;  %3039 = vmatprep.mubr.bf16.mxu1 %v4581_v15 }
 0x26a   :  { %3085 = vmatprep.subr.bf16.mxu1 %v4073_v38 }
 0x26d   :  { %3086 = vmatpush3.bf16.msra.mxu1 %v4073_v38 }
 0x26e   :  { %3087 = vmatprep.subr.bf16.mxu1 %v584_v34 }
 0x270   :  { %3040 = vmatmul.mubr.bf16.gmra.mrb[28].mxu1 %v4580_v18 }
 0x271   :  { %3088 = vmatpush3.bf16.msra.mxu1 %v584_v34  ;;  %3091 = vmatprep.mubr.bf16.mxu1 %v4579_v16 }
 0x272   :  { %3089 = vmatprep.subr.bf16.mxu1 %v585_v6 }
 0x275   :  { %3090 = vmatpush3.bf16.msra.mxu1 %v585_v6 }
 0x276   :  { %3139 = vmatprep.subr.bf16.mxu1 %v3827_v40 }
 0x278   :  { %3092 = vmatmul.mubr.bf16.vlgmr.msra.gmra.mrb[32].mxu1 %v4578_v20 }
 0x279   :  { %3095 = vmatprep.mubr.bf16.mxu1 %v4577_v21  ;;  %3140 = vmatpush3.bf16.msra.mxu1 %v3827_v40  ;;  %v4178_v40 = vld [vmem:[%s4559_s1 + $0x38] sm:$0xff] }
 0x27a   :  { %3141 = vmatprep.subr.bf16.mxu1 %v3832_v41 }
 0x27d   :  { %3142 = vmatpush3.bf16.msra.mxu1 %v3832_v41  ;;  %v4573_v41 = vunpack.c.l.s8.bf16 %v4178_v40 }
 0x27e   :  { %3143 = vmatprep.subr.bf16.mxu1 %v3840_v42 }
 0x280   :  { %3096 = vmatmul.mubr.bf16.gmra.mrb[36].mxu1 %v4576_v24 }
 0x281   :  { %3099 = vmatprep.mubr.bf16.mxu1 %v4575_v26  ;;  %3144 = vmatpush3.bf16.msra.mxu1 %v3840_v42  ;;  %v4572_v42 = vunpack.c.h.s8.bf16 %v4178_v40  ;;  %v4314_v26 = vld [vmem:[%s4565_s7 + $0xb0] sm:$0xff]  }
 0x282   :  { %3145 = vmatprep.subr.bf16.mxu1 %v3847_v43 }
 0x285   :  { %3146 = vmatpush3.bf16.msra.mxu1 %v3847_v43  ;;  %v4203_v43 = vld [vmem:[%s4565_s7 + $0x70] sm:$0xff]  }
 0x286   :  { %3147 = vmatprep.subr.bf16.mxu1 %v3854_v44  ;;  %3055 = vmatprep.subr.bf16.mxu0 %v4203_v43 }
 0x287   :  { %3056 = vmatpush3.bf16.msra.mxu0 %v4203_v43 }
 0x288   :  { %3100 = vmatmul.mubr.bf16.gmra.mrb[40].mxu1 %v4574_v27 }
 0x289   :  { %3103 = vmatprep.mubr.bf16.mxu1 %v4573_v41  ;;  %3148 = vmatpush3.bf16.msra.mxu1 %v3854_v44  ;;  %v4210_v44 = vld [vmem:[%s4565_s7 + $0x78] sm:$0xff]  }
 0x28a   :  { %3149 = vmatprep.subr.bf16.mxu1 %v3883_v60  ;;  %3057 = vmatprep.subr.bf16.mxu0 %v4210_v44 }
 0x28b   :  { %3058 = vmatpush3.bf16.msra.mxu0 %v4210_v44 }
 0x28d   :  { %3150 = vmatpush3.bf16.msra.mxu1 %v3883_v60  ;;  %v4217_v60 = vld [vmem:[%s4565_s7 + $0x80] sm:$0xff]  }
 0x28e   :  { %3151 = vmatprep.subr.bf16.mxu1 %v3890_v45  ;;  %3107 = vmatprep.subr.bf16.mxu0 %v4217_v60 }
 0x290   :  { %3104 = vmatmul.mubr.bf16.gmra.mrb[44].mxu1 %v4572_v42 }
 0x291   :  { %3152 = vmatpush3.bf16.msra.mxu1 %v3890_v45  ;;  %v4220_v45 = vpop.permute.xlu0 %881 }
 0x292   :  { %3153 = vmatprep.subr.bf16.mxu1 %v3897_v61 }
 0x295   :  { %3154 = vmatpush3.bf16.msra.mxu1 %v3897_v61  ;;  %v4222_v61 = vpop.permute.xlu1 %891  ;;  %v4224_v28 = vpop.permute.xlu0 %886 }
 0x296   :  { %3203 = vmatprep.subr.bf16.mxu1 %v3978_v23 }
 0x299   :  { %v4226_v29 = vpop.permute.xlu1 %896  ;;  %v4228_v30 = vpop.permute.xlu0 %901 }
 0x29d   :  { %v4230_v31 = vpop.permute.xlu1 %906  ;;  %v4232_v32 = vpop.permute.xlu0 %911 }
 0x2a1   :  { %v4234_v35 = vpop.permute.xlu1 %916  ;;  %v4236_v36 = vpop.permute.xlu0 %921 }
 0x2a5   :  { %v4238_v37 = vpop.permute.xlu1 %926  ;;  %v4240_v38 = vpop.permute.xlu0 %931 }
 0x2a9   :  { %v4242_v39 = vpop.permute.xlu1 %936  ;;  %v4244_v49 = vpop.permute.xlu0 %941 }
 0x2ad   :  { %v4248_v54 = vpop.permute.xlu1 %946  ;;  %v4257_v3 = vpop.permute.xlu0 %951 }
 0x2b1   :  { %v4259_v6 = vpop.permute.xlu1 %956 }
 0x32b   :  { %v3029_v46 = vpop.f32.mrb[16].mxu1 }
 0x32c   :  { %v800_v47 = vpop.f32.mrb[17].mxu1  ;;  %v961_v50 = vmul.f32 %v3029_v46, %v4222_v61 }
 0x32d   :  { %v3030_v48 = vpop.f32.mrb[18].mxu1  ;;  %v959_v55 = vmul.f32 %v4220_v45, %v800_v47 }
 0x32e   :  { %v962_v51 = vmul.f32 %v3030_v48, %v4226_v29  ;;  %v803_v53 = vpop.f32.mrb[19].mxu1  ;;  %v4268_v48 = vld [vmem:[%s4565_s7 + $0x90] sm:$0xff]  }
 0x32f   :  { %v960_v57 = vmul.f32 %v4224_v28, %v803_v53 }
 0x330   :  { %v976_v58 = vpack.c.bf16 %v962_v51, %v961_v50 }
 0x331   :  { %v975_v0 = vpack.c.bf16 %v960_v57, %v959_v55  ;;  %v4273_v57 = vpop.permute.xlu0 %1290 }
 0x332   :  { %4594 = vst [vmem:[#allocation16_spill] sm:$0xff] %v4273_v57 }
 0x333   :  { %v3033_v2 = vpop.f32.mrb[20].mxu1  ;;  %3059 = vmatprep.mubr.bf16.mxu0 %v975_v0  ;;  %v4281_v0 = vpop.permute.xlu1 %1295 }
 0x334   :  { %v816_v5 = vpop.f32.mrb[21].mxu1  ;;  %3060 = vmatmul.mubr.bf16.vlgmr.msra.gmra.mrb[16].mxu0 %v976_v58  ;;  %v965_v34 = vmul.f32 %v3033_v2, %v4232_v32  ;;  %v4279_v58 = vld [vmem:[%s4565_s7 + $0x98] sm:$0xff]   ;;  %4595 = vst [vmem:[#allocation17_spill] sm:$0xff] %v4281_v0 }
 0x335   :  { %v3034_v7 = vpop.f32.mrb[22].mxu1  ;;  %3108 = vmatpush3.bf16.msra.mxu0 %v4217_v60  ;;  %v963_v50 = vmul.f32 %v4228_v30, %v816_v5 }
 0x336   :  { %v966_v46 = vmul.f32 %v3034_v7, %v4234_v35  ;;  %v819_v47 = vpop.f32.mrb[23].mxu1  ;;  %3109 = vmatprep.subr.bf16.mxu0 %v4255_v1 }
 0x337   :  { %v964_v51 = vmul.f32 %v4230_v31, %v819_v47  ;;  %v4296_v41 = vpop.permute.xlu1 %1305 }
 0x338   :  { %v978_v53 = vpack.c.bf16 %v966_v46, %v965_v34 }
 0x339   :  { %v977_v55 = vpack.c.bf16 %v964_v51, %v963_v50  ;;  %3110 = vmatpush3.bf16.msra.mxu0 %v4255_v1  ;;  %v4290_v50 = vld [vmem:[%s4565_s7 + $0xa0] sm:$0xff]  }
 0x33a   :  { %3111 = vmatprep.subr.bf16.mxu0 %v4268_v48 }
 0x33b   :  { %v3037_v2 = vpop.f32.mrb[24].mxu1  ;;  %3063 = vmatprep.mubr.bf16.mxu0 %v977_v55 }
 0x33c   :  { %v832_v5 = vpop.f32.mrb[25].mxu1  ;;  %3064 = vmatmul.mubr.bf16.gmra.mrb[20].mxu0 %v978_v53  ;;  %v969_v34 = vmul.f32 %v3037_v2, %v4240_v38  ;;  %v4294_v53 = vpop.permute.xlu0 %1300 }
 0x33d   :  { %v3038_v7 = vpop.f32.mrb[26].mxu1  ;;  %3112 = vmatpush3.bf16.msra.mxu0 %v4268_v48  ;;  %v967_v51 = vmul.f32 %v4236_v36, %v832_v5 }
 0x33e   :  { %v970_v46 = vmul.f32 %v3038_v7, %v4242_v39  ;;  %v835_v47 = vpop.f32.mrb[27].mxu1  ;;  %3113 = vmatprep.subr.bf16.mxu0 %v4279_v58  ;;  %v4303_v7 = vld [vmem:[%s4565_s7 + $0xa8] sm:$0xff]  }
 0x33f   :  { %v968_v55 = vmul.f32 %v4238_v37, %v835_v47 }
 0x340   :  { %v980_v42 = vpack.c.bf16 %v970_v46, %v969_v34  ;;  %v4306_v34 = vpop.permute.xlu0 %1310 }
 0x341   :  { %v979_v2 = vpack.c.bf16 %v968_v55, %v967_v51  ;;  %3114 = vmatpush3.bf16.msra.mxu0 %v4279_v58  ;;  %4596 = vst [vmem:[#allocation18_spill] sm:$0xff] %v4306_v34 }
 0x342   :  { %3115 = vmatprep.subr.bf16.mxu0 %v4290_v50 }
 0x343   :  { %v3041_v27 = vpop.f32.mrb[28].mxu1  ;;  %3067 = vmatprep.mubr.bf16.mxu0 %v979_v2  ;;  %v4316_v2 = vpop.permute.xlu1 %1315 }
 0x344   :  { %v848_v5 = vpop.f32.mrb[29].mxu1  ;;  %3068 = vmatmul.mubr.bf16.gmra.mrb[24].mxu0 %v980_v42  ;;  %v973_v46 = vmul.f32 %v3041_v27, %v4257_v3  ;;  %4597 = vst [vmem:[#allocation19_spill] sm:$0xff] %v4316_v2  ;;  %v4325_v27 = vld [vmem:[%s4565_s7 + $0xb8] sm:$0xff]   ;;  %v4327_v16 = vpop.permute.xlu0 %1320 }
 0x345   :  { %v3042_v47 = vpop.f32.mrb[30].mxu1  ;;  %3116 = vmatpush3.bf16.msra.mxu0 %v4290_v50  ;;  %v971_v42 = vmul.f32 %v4244_v49, %v848_v5 }
 0x346   :  { %v974_v51 = vmul.f32 %v3042_v47, %v4259_v6  ;;  %v851_v55 = vpop.f32.mrb[31].mxu1  ;;  %3117 = vmatprep.subr.bf16.mxu0 %v4303_v7 }
 0x347   :  { %v972_v24 = vmul.f32 %v4248_v54, %v851_v55  ;;  %v4329_v5 = vpop.permute.xlu1 %1325 }
 0x348   :  { %v982_v21 = vpack.c.bf16 %v974_v51, %v973_v46 }
 0x349   :  { %v981_v20 = vpack.c.bf16 %v972_v24, %v971_v42  ;;  %3118 = vmatpush3.bf16.msra.mxu0 %v4303_v7 }
 0x34a   :  { %3119 = vmatprep.subr.bf16.mxu0 %v4314_v26 }
 0x34b   :  { %3071 = vmatprep.mubr.bf16.mxu0 %v981_v20  ;;  %v3093_v47 = vpop.f32.mrb[32].mxu1  ;;  %v4340_v14 = vpop.permute.xlu1 %1335 }
 0x34c   :  { %3072 = vmatmul.mubr.bf16.gmra.mrb[28].mxu0 %v982_v21  ;;  %v1208_v18 = vpop.f32.mrb[33].mxu1  ;;  %v1370_v24 = vmul.f32 %v3093_v47, %v4294_v53  ;;  %v4338_v21 = vpop.permute.xlu0 %1330 }
 0x34d   :  { %v3094_v55 = vpop.f32.mrb[34].mxu1  ;;  %3120 = vmatpush3.bf16.msra.mxu0 %v4314_v26  ;;  %v1368_v42 = vmul.f32 %v4273_v57, %v1208_v18 }
 0x34e   :  { %v1371_v46 = vmul.f32 %v3094_v55, %v4296_v41  ;;  %v1211_v51 = vpop.f32.mrb[35].mxu1  ;;  %3121 = vmatprep.subr.bf16.mxu0 %v4325_v27 }
 0x34f   :  { %v1369_v20 = vmul.f32 %v4281_v0, %v1211_v51 }
 0x350   :  { %v1385_v15 = vpack.c.bf16 %v1371_v46, %v1370_v24  ;;  %v4346_v46 = vpop.permute.xlu0 %1340 }
 0x351   :  { %v1384_v56 = vpack.c.bf16 %v1369_v20, %v1368_v42  ;;  %3122 = vmatpush3.bf16.msra.mxu0 %v4325_v27  ;;  %4598 = vst [vmem:[#allocation20_spill] sm:$0xff] %v4346_v46  ;;  %v4348_v20 = vpop.permute.xlu1 %1345 }
 0x352   :  { %4599 = vst [vmem:[#allocation21_spill] sm:$0xff] %v4348_v20 }
 0x353   :  { %v3097_v13 = vpop.f32.mrb[36].mxu1  ;;  %3123 = vmatprep.mubr.bf16.mxu0 %v1384_v56 }
 0x354   :  { %v1224_v47 = vpop.f32.mrb[37].mxu1  ;;  %3124 = vmatmul.mubr.bf16.vlgmr.msra.gmra.mrb[16].mxu0 %v1385_v15  ;;  %v1374_v10 = vmul.f32 %v3097_v13, %v4327_v16  ;;  %v4350_v57 = vpop.permute.xlu0 %1350 }
 0x355   :  { %v3098_v55 = vpop.f32.mrb[38].mxu1  ;;  %v1372_v51 = vmul.f32 %v4306_v34, %v1224_v47  ;;  %v4354_v34 = vpop.permute.xlu1 %1355 }
 0x356   :  { %v1375_v9 = vmul.f32 %v3098_v55, %v4329_v5  ;;  %v1227_v18 = vpop.f32.mrb[39].mxu1 }
 0x357   :  { %v1373_v24 = vmul.f32 %v4316_v2, %v1227_v18 }
 0x358   :  { %v1387_v42 = vpack.c.bf16 %v1375_v9, %v1374_v10 }
 0x359   :  { %v1386_v63 = vpack.c.bf16 %v1373_v24, %v1372_v51  ;;  %v4360_v2 = vpop.permute.xlu1 %1365 }
 0x35b   :  { %v3101_v0 = vpop.f32.mrb[40].mxu1  ;;  %3127 = vmatprep.mubr.bf16.mxu0 %v1386_v63  ;;  %v4358_v63 = vpop.permute.xlu0 %1360 }
 0x35c   :  { %v1240_v56 = vpop.f32.mrb[41].mxu1  ;;  %3128 = vmatmul.mubr.bf16.gmra.mrb[20].mxu0 %v1387_v42  ;;  %v1378_v13 = vmul.f32 %v3101_v0, %v4346_v46 }
 0x35d   :  { %v3102_v15 = vpop.f32.mrb[42].mxu1  ;;  %v1376_v18 = vmul.f32 %v4338_v21, %v1240_v56 }
 0x35e   :  { %v1379_v55 = vmul.f32 %v3102_v15, %v4348_v20  ;;  %v1243_v47 = vpop.f32.mrb[43].mxu1 }
 0x35f   :  { %v1377_v9 = vmul.f32 %v4340_v14, %v1243_v47 }
 0x360   :  { %v1389_v10 = vpack.c.bf16 %v1379_v55, %v1378_v13 }
 0x361   :  { %v1388_v51 = vpack.c.bf16 %v1377_v9, %v1376_v18  ;;  %v4600_v18 = vunpack.c.l.s8.bf16 %v3904_v62  ;;  %v4371_v9 = vld [vmem:[%s4566_s8] ss:$0 sm:$0xff] }
 0x363   :  { %v3105_v24 = vpop.f32.mrb[44].mxu1  ;;  %3131 = vmatprep.mubr.bf16.mxu0 %v1388_v51 }
 0x364   :  { %v1256_v42 = vpop.f32.mrb[45].mxu1  ;;  %3132 = vmatmul.mubr.bf16.gmra.mrb[24].mxu0 %v1389_v10  ;;  %v1382_v15 = vmul.f32 %v3105_v24, %v4358_v63 }
 0x365   :  { %v3106_v0 = vpop.f32.mrb[46].mxu1  ;;  %v1380_v56 = vmul.f32 %v4350_v57, %v1256_v42 }
 0x366   :  { %v1383_v20 = vmul.f32 %v3106_v0, %v4360_v2  ;;  %v1259_v46 = vpop.f32.mrb[47].mxu1 }
 0x367   :  { %v1381_v47 = vmul.f32 %v4354_v34, %v1259_v46 }
 0x368   :  { %v1391_v13 = vpack.c.bf16 %v1383_v20, %v1382_v15 }
 0x369   :  { %v1390_v55 = vpack.c.bf16 %v1381_v47, %v1380_v56 }
 0x36b   :  { %3135 = vmatprep.mubr.bf16.mxu0 %v1390_v55 }
 0x36c   :  { %3136 = vmatmul.mubr.bf16.gmra.mrb[28].mxu0 %v1391_v13 }
 0x36d   :  { %3187 = vmatprep.mubr.bf16.mxu0 %v4600_v18 }
 0x427   :  { %v3125_v10 = vpop.f32.mrb[16].mxu0 }
 0x428   :  { %v1491_v51 = vpop.f32.mrb[17].mxu0  ;;  %v3363_v0 = vadd.f32 %v3125_v10, %v4371_v9 }
 0x429   :  { %v3126_v24 = vpop.f32.mrb[18].mxu0  ;;  %v3364_v20 = vadd.f32 %v4371_v9, %v1491_v51 }
 0x42a   :  { %v3365_v42 = vadd.f32 %v3126_v24, %v4371_v9  ;;  %v1494_v46 = vpop.f32.mrb[19].mxu0 }
 0x42b   :  { %v3366_v15 = vadd.f32 %v4371_v9, %v1494_v46 }
 0x42c   :  { %v4377_v56 = vpack.c.bf16 %v3365_v42, %v3363_v0 }
 0x42d   :  { %v4379_v47 = vpack.c.bf16 %v3366_v15, %v3364_v20 }
 0x42f   :  { %v3129_v13 = vpop.f32.mrb[20].mxu0  ;;  %3155 = vmatprep.mubr.bf16.mxu1 %v4379_v47  ;;  %3171 = vmatprep.subr.bf16.mxu0 %v4379_v47 }
 0x430   :  { %v1507_v55 = vpop.f32.mrb[21].mxu0  ;;  %3156 = vmatmul.mubr.bf16.vlgmr.msra.gmra.mrb[48].mxu1 %v4377_v56  ;;  %3172 = vmatpush3.bf16.msra.mxu0 %v4379_v47  ;;  %v3367_v10 = vadd.f32 %v3129_v13, %v4371_v9 }
 0x431   :  { %v3130_v18 = vpop.f32.mrb[22].mxu0  ;;  %3173 = vmatprep.subr.bf16.mxu0 %v4377_v56  ;;  %3204 = vmatpush3.bf16.msra.mxu1 %v3978_v23  ;;  %v3368_v0 = vadd.f32 %v4371_v9, %v1507_v55 }
 0x432   :  { %v3369_v51 = vadd.f32 %v3130_v18, %v4371_v9  ;;  %v1510_v24 = vpop.f32.mrb[23].mxu0  ;;  %3205 = vmatprep.subr.bf16.mxu1 %v4029_v4 }
 0x433   :  { %v3370_v42 = vadd.f32 %v4371_v9, %v1510_v24 }
 0x434   :  { %v4392_v46 = vpack.c.bf16 %v3369_v51, %v3367_v10  ;;  %3174 = vmatpush3.bf16.msra.mxu0 %v4377_v56 }
 0x435   :  { %v1572_v20 = vpack.c.bf16 %v3370_v42, %v3368_v0  ;;  %3206 = vmatpush3.bf16.msra.mxu1 %v4029_v4 }
 0x436   :  { %3207 = vmatprep.subr.bf16.mxu1 %v4043_v12 }
 0x437   :  { %v3133_v23 = vpop.f32.mrb[24].mxu0  ;;  %3159 = vmatprep.mubr.bf16.mxu1 %v1572_v20  ;;  %3175 = vmatprep.subr.bf16.mxu0 %v1572_v20 }
 0x438   :  { %v1523_v15 = vpop.f32.mrb[25].mxu0  ;;  %3160 = vmatmul.mubr.bf16.gmra.mrb[52].mxu1 %v4392_v46  ;;  %3176 = vmatpush3.bf16.msra.mxu0 %v1572_v20  ;;  %v3371_v55 = vadd.f32 %v3133_v23, %v4371_v9 }
 0x439   :  { %v3134_v13 = vpop.f32.mrb[26].mxu0  ;;  %3177 = vmatprep.subr.bf16.mxu0 %v4392_v46  ;;  %3208 = vmatpush3.bf16.msra.mxu1 %v4043_v12  ;;  %v3372_v4 = vadd.f32 %v4371_v9, %v1523_v15 }
 0x43a   :  { %v3373_v18 = vadd.f32 %v3134_v13, %v4371_v9  ;;  %v1526_v10 = vpop.f32.mrb[27].mxu0  ;;  %3209 = vmatprep.subr.bf16.mxu1 %v4057_v25 }
 0x43b   :  { %v3374_v51 = vadd.f32 %v4371_v9, %v1526_v10 }
 0x43c   :  { %v1575_v24 = vpack.c.bf16 %v3373_v18, %v3371_v55  ;;  %3178 = vmatpush3.bf16.msra.mxu0 %v4392_v46 }
 0x43d   :  { %v1574_v0 = vpack.c.bf16 %v3374_v51, %v3372_v4  ;;  %3210 = vmatpush3.bf16.msra.mxu1 %v4057_v25  ;;  %v4612_v51 = vunpack.c.l.s8.bf16 %v4163_v22 }
 0x43e   :  { %3211 = vmatprep.subr.bf16.mxu1 %v4071_v33 }
 0x43f   :  { %v3137_v12 = vpop.f32.mrb[28].mxu0  ;;  %3163 = vmatprep.mubr.bf16.mxu1 %v1574_v0  ;;  %3179 = vmatprep.subr.bf16.mxu0 %v1574_v0 }
 0x440   :  { %v1539_v42 = vpop.f32.mrb[29].mxu0  ;;  %3164 = vmatmul.mubr.bf16.gmra.mrb[56].mxu1 %v1575_v24  ;;  %3180 = vmatpush3.bf16.msra.mxu0 %v1574_v0  ;;  %v3375_v15 = vadd.f32 %v3137_v12, %v4371_v9  ;;  %v3513_v12 = vld [vmem:[#allocation8 + $0x8] sm:$0xff]  }
 0x441   :  { %v3138_v23 = vpop.f32.mrb[30].mxu0  ;;  %3181 = vmatprep.subr.bf16.mxu0 %v1575_v24  ;;  %3212 = vmatpush3.bf16.msra.mxu1 %v4071_v33  ;;  %v3376_v25 = vadd.f32 %v4371_v9, %v1539_v42  ;;  %v4601_v33 = vunpack.c.h.s8.bf16 %v3904_v62  ;;  %v4605_v62 = vunpack.c.h.s8.bf16 %v4110_v11  ;;  %v3514_v42 = vld [vmem:[#allocation8 + $0x10] sm:$0xff]  }
 0x442   :  { %v3377_v13 = vadd.f32 %v3138_v23, %v4371_v9  ;;  %v1542_v55 = vpop.f32.mrb[31].mxu0  ;;  %3213 = vmatprep.subr.bf16.mxu1 %v4083_v52  ;;  %v3516_v23 = vld [vmem:[#allocation8 + $0x20] sm:$0xff]  }
 0x443   :  { %v3378_v18 = vadd.f32 %v4371_v9, %v1542_v55 }
 0x444   :  { %v1577_v10 = vpack.c.bf16 %v3377_v13, %v3375_v15  ;;  %3182 = vmatpush3.bf16.msra.mxu0 %v1575_v24 }
 0x445   :  { %v1576_v4 = vpack.c.bf16 %v3378_v18, %v3376_v25  ;;  %3214 = vmatpush3.bf16.msra.mxu1 %v4083_v52  ;;  %v4602_v52 = vunpack.c.l.s8.bf16 %v4096_v8 }
 0x446   :  { %3215 = vmatprep.subr.bf16.mxu1 %v4203_v43 }
 0x447   :  { %3167 = vmatprep.mubr.bf16.mxu1 %v1576_v4  ;;  %3183 = vmatprep.subr.bf16.mxu0 %v1576_v4 }
 0x448   :  { %3168 = vmatmul.mubr.bf16.gmra.mrb[60].mxu1 %v1577_v10  ;;  %3184 = vmatpush3.bf16.msra.mxu0 %v1576_v4 }
 0x449   :  { %3185 = vmatprep.subr.bf16.mxu0 %v1577_v10  ;;  %3216 = vmatpush3.bf16.msra.mxu1 %v4203_v43  ;;  %v4603_v43 = vunpack.c.h.s8.bf16 %v4096_v8  ;;  %v4607_v8 = vunpack.c.h.s8.bf16 %v4125_v59 }
 0x44a   :  { %3217 = vmatprep.subr.bf16.mxu1 %v4210_v44 }
 0x44c   :  { %3186 = vmatpush3.bf16.msra.mxu0 %v1577_v10 }
 0x44d   :  { %3235 = vmatprep.subr.bf16.mxu0 %v4379_v47  ;;  %3218 = vmatpush3.bf16.msra.mxu1 %v4210_v44  ;;  %v4604_v44 = vunpack.c.l.s8.bf16 %v4110_v11  ;;  %v4610_v11 = vunpack.c.l.s8.bf16 %v4150_v19 }
 0x44e   :  { %3267 = vmatprep.subr.bf16.mxu1 %v4217_v60 }
 0x44f   :  { %3188 = vmatmul.mubr.bf16.vlgmr.msra.gmra.mrb[32].mxu0 %v4601_v33 }
 0x450   :  { %3236 = vmatpush3.bf16.msra.mxu0 %v4379_v47  ;;  %3191 = vmatprep.mubr.bf16.mxu0 %v4602_v52  ;;  %v4606_v47 = vunpack.c.l.s8.bf16 %v4125_v59  ;;  %v4613_v59 = vunpack.c.h.s8.bf16 %v4163_v22  ;;  %v3517_v22 = vld [vmem:[#allocation8 + $0x28] sm:$0xff]  }
 0x451   :  { %3237 = vmatprep.subr.bf16.mxu0 %v4377_v56 }
 0x454   :  { %3238 = vmatpush3.bf16.msra.mxu0 %v4377_v56  ;;  %v4608_v56 = vunpack.c.l.s8.bf16 %v4138_v17 }
 0x455   :  { %3239 = vmatprep.subr.bf16.mxu0 %v1572_v20 }
 0x457   :  { %3192 = vmatmul.mubr.bf16.gmra.mrb[36].mxu0 %v4603_v43 }
 0x458   :  { %3240 = vmatpush3.bf16.msra.mxu0 %v1572_v20  ;;  %3195 = vmatprep.mubr.bf16.mxu0 %v4604_v44  ;;  %v4611_v20 = vunpack.c.h.s8.bf16 %v4150_v19  ;;  %v3515_v19 = vld [vmem:[#allocation8 + $0x18] sm:$0xff]  }
 0x459   :  { %3241 = vmatprep.subr.bf16.mxu0 %v4392_v46 }
 0x45c   :  { %3242 = vmatpush3.bf16.msra.mxu0 %v4392_v46  ;;  %v4609_v46 = vunpack.c.h.s8.bf16 %v4138_v17  ;;  %v3512_v17 = vld [vmem:[#allocation8] sm:$0xff]  }
 0x45d   :  { %3243 = vmatprep.subr.bf16.mxu0 %v1574_v0 }
 0x45f   :  { %3196 = vmatmul.mubr.bf16.gmra.mrb[40].mxu0 %v4605_v62 }
 0x460   :  { %3244 = vmatpush3.bf16.msra.mxu0 %v1574_v0  ;;  %3199 = vmatprep.mubr.bf16.mxu0 %v4606_v47  ;;  %v4615_v0 = vunpack.c.h.s8.bf16 %v4178_v40 }
 0x461   :  { %3245 = vmatprep.subr.bf16.mxu0 %v1575_v24 }
 0x464   :  { %3246 = vmatpush3.bf16.msra.mxu0 %v1575_v24  ;;  %v4614_v24 = vunpack.c.l.s8.bf16 %v4178_v40 }
 0x465   :  { %3247 = vmatprep.subr.bf16.mxu0 %v1576_v4 }
 0x467   :  { %3200 = vmatmul.mubr.bf16.gmra.mrb[44].mxu0 %v4607_v8 }
 0x468   :  { %3248 = vmatpush3.bf16.msra.mxu0 %v1576_v4  ;;  %3251 = vmatprep.mubr.bf16.mxu0 %v4608_v56 }
 0x469   :  { %3249 = vmatprep.subr.bf16.mxu0 %v1577_v10 }
 0x46c   :  { %3250 = vmatpush3.bf16.msra.mxu0 %v1577_v10 }
 0x46d   :  { %3299 = vmatprep.subr.bf16.mxu0 %v3512_v17 }
 0x46f   :  { %3252 = vmatmul.mubr.bf16.vlgmr.msra.gmra.mrb[48].mxu0 %v4609_v46 }
 0x470   :  { %3255 = vmatprep.mubr.bf16.mxu0 %v4610_v11  ;;  %3300 = vmatpush3.bf16.msra.mxu0 %v3512_v17 }
 0x471   :  { %3301 = vmatprep.subr.bf16.mxu0 %v3513_v12 }
 0x474   :  { %3302 = vmatpush3.bf16.msra.mxu0 %v3513_v12 }
 0x475   :  { %3303 = vmatprep.subr.bf16.mxu0 %v3514_v42 }
 0x477   :  { %3256 = vmatmul.mubr.bf16.gmra.mrb[52].mxu0 %v4611_v20 }
 0x478   :  { %3259 = vmatprep.mubr.bf16.mxu0 %v4612_v51  ;;  %3304 = vmatpush3.bf16.msra.mxu0 %v3514_v42 }
 0x479   :  { %3305 = vmatprep.subr.bf16.mxu0 %v3515_v19 }
 0x47c   :  { %3306 = vmatpush3.bf16.msra.mxu0 %v3515_v19 }
 0x47d   :  { %3307 = vmatprep.subr.bf16.mxu0 %v3516_v23 }
 0x47f   :  { %3260 = vmatmul.mubr.bf16.gmra.mrb[56].mxu0 %v4613_v59 }
 0x480   :  { %3263 = vmatprep.mubr.bf16.mxu0 %v4614_v24  ;;  %3308 = vmatpush3.bf16.msra.mxu0 %v3516_v23  ;;  %v4617_v23 = vld [vmem:[#allocation17_spill] sm:$0xff] }
 0x481   :  { %3309 = vmatprep.subr.bf16.mxu0 %v3517_v22 }
 0x484   :  { %3310 = vmatpush3.bf16.msra.mxu0 %v3517_v22 }
 0x487   :  { %3264 = vmatmul.mubr.bf16.gmra.mrb[60].mxu0 %v4615_v0 }
 0x522   :  { %v3189_v40 = vpop.f32.mrb[32].mxu0 }
 0x523   :  { %v1709_v15 = vpop.f32.mrb[33].mxu0  ;;  %v1774_v55 = vmul.f32 %v3189_v40, %v4222_v61 }
 0x524   :  { %v3190_v13 = vpop.f32.mrb[34].mxu0  ;;  %v1772_v10 = vmul.f32 %v1709_v15, %v4220_v45 }
 0x525   :  { %v1775_v25 = vmul.f32 %v3190_v13, %v4226_v29  ;;  %v1712_v18 = vpop.f32.mrb[35].mxu0 }
 0x526   :  { %v1773_v4 = vmul.f32 %v1712_v18, %v4224_v28 }
 0x527   :  { %v1789_v33 = vpack.c.bf16 %v1775_v25, %v1774_v55  ;;  %v4618_v25 = vld [vmem:[#allocation18_spill] sm:$0xff] }
 0x528   :  { %v1788_v52 = vpack.c.bf16 %v1773_v4, %v1772_v10  ;;  %v4619_v10 = vld [vmem:[#allocation19_spill] sm:$0xff] }
 0x52a   :  { %v3193_v43 = vpop.f32.mrb[36].mxu0  ;;  %3219 = vmatprep.mubr.bf16.mxu1 %v1788_v52 }
 0x52b   :  { %v1725_v44 = vpop.f32.mrb[37].mxu0  ;;  %3220 = vmatmul.mubr.bf16.vlgmr.msra.gmra.mrb[48].mxu1 %v1789_v33  ;;  %v1778_v47 = vmul.f32 %v3193_v43, %v4232_v32 }
 0x52c   :  { %v3194_v62 = vpop.f32.mrb[38].mxu0  ;;  %3268 = vmatpush3.bf16.msra.mxu1 %v4217_v60  ;;  %v1776_v45 = vmul.f32 %v1725_v44, %v4228_v30 }
 0x52d   :  { %v1779_v61 = vmul.f32 %v3194_v62, %v4234_v35  ;;  %v1728_v8 = vpop.f32.mrb[39].mxu0  ;;  %3269 = vmatprep.subr.bf16.mxu1 %v4255_v1  ;;  %v4620_v62 = vld [vmem:[#allocation20_spill] sm:$0xff] }
 0x52e   :  { %v1777_v28 = vmul.f32 %v1728_v8, %v4230_v31 }
 0x52f   :  { %v1791_v29 = vpack.c.bf16 %v1779_v61, %v1778_v47  ;;  %v4621_v61 = vld [vmem:[#allocation21_spill] sm:$0xff] }
 0x530   :  { %v1790_v56 = vpack.c.bf16 %v1777_v28, %v1776_v45  ;;  %3270 = vmatpush3.bf16.msra.mxu1 %v4255_v1 }
 0x531   :  { %3271 = vmatprep.subr.bf16.mxu1 %v4268_v48 }
 0x532   :  { %v3197_v46 = vpop.f32.mrb[40].mxu0  ;;  %3223 = vmatprep.mubr.bf16.mxu1 %v1790_v56 }
 0x533   :  { %v1741_v60 = vpop.f32.mrb[41].mxu0  ;;  %3224 = vmatmul.mubr.bf16.gmra.mrb[52].mxu1 %v1791_v29  ;;  %v1782_v35 = vmul.f32 %v3197_v46, %v4240_v38 }
 0x534   :  { %v3198_v32 = vpop.f32.mrb[42].mxu0  ;;  %3272 = vmatpush3.bf16.msra.mxu1 %v4268_v48  ;;  %v1780_v31 = vmul.f32 %v1741_v60, %v4236_v36 }
 0x535   :  { %v1783_v11 = vmul.f32 %v3198_v32, %v4242_v39  ;;  %v1744_v30 = vpop.f32.mrb[43].mxu0  ;;  %3273 = vmatprep.subr.bf16.mxu1 %v4279_v58 }
 0x536   :  { %v1781_v1 = vmul.f32 %v1744_v30, %v4238_v37 }
 0x537   :  { %v1793_v20 = vpack.c.bf16 %v1783_v11, %v1782_v35 }
 0x538   :  { %v1792_v51 = vpack.c.bf16 %v1781_v1, %v1780_v31  ;;  %3274 = vmatpush3.bf16.msra.mxu1 %v4279_v58 }
 0x539   :  { %3275 = vmatprep.subr.bf16.mxu1 %v4290_v50 }
 0x53a   :  { %v3201_v59 = vpop.f32.mrb[44].mxu0  ;;  %3227 = vmatprep.mubr.bf16.mxu1 %v1792_v51  ;;  %v3520_v51 = vld [vmem:[#allocation10] sm:$0xff]  }
 0x53b   :  { %v1757_v48 = vpop.f32.mrb[45].mxu0  ;;  %3228 = vmatmul.mubr.bf16.gmra.mrb[56].mxu1 %v1793_v20  ;;  %v1786_v39 = vmul.f32 %v3201_v59, %v4257_v3  ;;  %v3519_v20 = vld [vmem:[#allocation8 + $0x38] sm:$0xff]   ;;  %v3521_v59 = vld [vmem:[#allocation10 + $0x8] sm:$0xff]  }
 0x53c   :  { %v3202_v38 = vpop.f32.mrb[46].mxu0  ;;  %3276 = vmatpush3.bf16.msra.mxu1 %v4290_v50  ;;  %v1784_v37 = vmul.f32 %v1757_v48, %v4244_v49 }
 0x53d   :  { %v1787_v24 = vmul.f32 %v3202_v38, %v4259_v6  ;;  %v1760_v36 = vpop.f32.mrb[47].mxu0  ;;  %3277 = vmatprep.subr.bf16.mxu1 %v4303_v7 }
 0x53e   :  { %v1785_v58 = vmul.f32 %v1760_v36, %v4248_v54  ;;  %v4616_v54 = vld [vmem:[#allocation16_spill] sm:$0xff] }
 0x53f   :  { %v1795_v0 = vpack.c.bf16 %v1787_v24, %v1786_v39 }
 0x540   :  { %v1794_v17 = vpack.c.bf16 %v1785_v58, %v1784_v37  ;;  %3278 = vmatpush3.bf16.msra.mxu1 %v4303_v7 }
 0x541   :  { %3279 = vmatprep.subr.bf16.mxu1 %v4314_v26 }
 0x542   :  { %3231 = vmatprep.mubr.bf16.mxu1 %v1794_v17  ;;  %v3253_v12 = vpop.f32.mrb[48].mxu0 }
 0x543   :  { %3232 = vmatmul.mubr.bf16.gmra.mrb[60].mxu1 %v1795_v0  ;;  %v1943_v50 = vpop.f32.mrb[49].mxu0  ;;  %v2008_v6 = vmul.f32 %v3253_v12, %v4294_v53 }
 0x544   :  { %v3254_v3 = vpop.f32.mrb[50].mxu0  ;;  %3280 = vmatpush3.bf16.msra.mxu1 %v4314_v26  ;;  %v2006_v19 = vmul.f32 %v1943_v50, %v4616_v54 }
 0x545   :  { %v2009_v42 = vmul.f32 %v3254_v3, %v4296_v41  ;;  %v1946_v49 = vpop.f32.mrb[51].mxu0  ;;  %3281 = vmatprep.subr.bf16.mxu1 %v4325_v27 }
 0x546   :  { %v2007_v7 = vmul.f32 %v1946_v49, %v4617_v23 }
 0x547   :  { %v2023_v22 = vpack.c.bf16 %v2009_v42, %v2008_v6 }
 0x548   :  { %v2022_v40 = vpack.c.bf16 %v2007_v7, %v2006_v19  ;;  %3282 = vmatpush3.bf16.msra.mxu1 %v4325_v27 }
 0x549   :  { %3331 = vmatprep.subr.bf16.mxu1 %v3520_v51 }
 0x54a   :  { %v3257_v15 = vpop.f32.mrb[52].mxu0  ;;  %3283 = vmatprep.mubr.bf16.mxu1 %v2022_v40 }
 0x54b   :  { %v1959_v13 = vpop.f32.mrb[53].mxu0  ;;  %3284 = vmatmul.mubr.bf16.vlgmr.msra.gmra.mrb[48].mxu1 %v2023_v22  ;;  %v2012_v53 = vmul.f32 %v3257_v15, %v4327_v16 }
 0x54c   :  { %v3258_v26 = vpop.f32.mrb[54].mxu0  ;;  %v2010_v18 = vmul.f32 %v1959_v13, %v4618_v25  ;;  %3332 = vmatpush3.bf16.msra.mxu1 %v3520_v51 }
 0x54d   :  { %v2013_v41 = vmul.f32 %v3258_v26, %v4329_v5  ;;  %v1962_v55 = vpop.f32.mrb[55].mxu0  ;;  %3333 = vmatprep.subr.bf16.mxu1 %v3521_v59 }
 0x54e   :  { %v2011_v4 = vmul.f32 %v1962_v55, %v4619_v10 }
 0x54f   :  { %v2025_v33 = vpack.c.bf16 %v2013_v41, %v2012_v53 }
 0x550   :  { %v2024_v52 = vpack.c.bf16 %v2011_v4, %v2010_v18  ;;  %3334 = vmatpush3.bf16.msra.mxu1 %v3521_v59 }
 0x552   :  { %v3261_v43 = vpop.f32.mrb[56].mxu0  ;;  %3287 = vmatprep.mubr.bf16.mxu1 %v2024_v52 }
 0x553   :  { %v1975_v44 = vpop.f32.mrb[57].mxu0  ;;  %3288 = vmatmul.mubr.bf16.gmra.mrb[52].mxu1 %v2025_v33  ;;  %v2016_v47 = vmul.f32 %v3261_v43, %v4620_v62 }
 0x554   :  { %v3262_v27 = vpop.f32.mrb[58].mxu0  ;;  %v2014_v16 = vmul.f32 %v1975_v44, %v4338_v21 }
 0x555   :  { %v2017_v8 = vmul.f32 %v3262_v27, %v4621_v61  ;;  %v1978_v45 = vpop.f32.mrb[59].mxu0 }
 0x556   :  { %v2015_v5 = vmul.f32 %v1978_v45, %v4340_v14  ;;  %v3518_v14 = vld [vmem:[#allocation8 + $0x30] sm:$0xff]  }
 0x557   :  { %v2027_v28 = vpack.c.bf16 %v2017_v8, %v2016_v47  ;;  %3311 = vmatprep.subr.bf16.mxu0 %v3518_v14  ;;  %v3525_v8 = vld [vmem:[#allocation10 + $0x28] sm:$0xff]   ;;  %v3526_v45 = vld [vmem:[#allocation10 + $0x30] sm:$0xff]  }
 0x558   :  { %v2026_v29 = vpack.c.bf16 %v2015_v5, %v2014_v16  ;;  %3312 = vmatpush3.bf16.msra.mxu0 %v3518_v14  ;;  %v3527_v16 = vld [vmem:[#allocation10 + $0x38] sm:$0xff]   ;;  %v4522_v5 = vld [vmem:[%s4568_s10] ss:$0 sm:$0xff] }
 0x559   :  { %3313 = vmatprep.subr.bf16.mxu0 %v3519_v20 }
 0x55a   :  { %v3265_v56 = vpop.f32.mrb[60].mxu0  ;;  %3291 = vmatprep.mubr.bf16.mxu1 %v2026_v29 }
 0x55b   :  { %v1991_v46 = vpop.f32.mrb[61].mxu0  ;;  %3292 = vmatmul.mubr.bf16.gmra.mrb[56].mxu1 %v2027_v28  ;;  %v2020_v32 = vmul.f32 %v3265_v56, %v4358_v63 }
 0x55c   :  { %v3266_v60 = vpop.f32.mrb[62].mxu0  ;;  %v2018_v30 = vmul.f32 %v1991_v46, %v4350_v57  ;;  %3314 = vmatpush3.bf16.msra.mxu0 %v3519_v20  ;;  %v3523_v57 = vld [vmem:[#allocation10 + $0x18] sm:$0xff]  }
 0x55d   :  { %v2021_v35 = vmul.f32 %v3266_v60, %v4360_v2  ;;  %v1994_v11 = vpop.f32.mrb[63].mxu0  ;;  %v3522_v2 = vld [vmem:[#allocation10 + $0x10] sm:$0xff]  }
 0x55e   :  { %v2019_v31 = vmul.f32 %v1994_v11, %v4354_v34  ;;  %3335 = vmatprep.subr.bf16.mxu1 %v3522_v2  ;;  %v3524_v34 = vld [vmem:[#allocation10 + $0x20] sm:$0xff]  }
 0x55f   :  { %v2029_v1 = vpack.c.bf16 %v2021_v35, %v2020_v32  ;;  %3336 = vmatpush3.bf16.msra.mxu1 %v3522_v2 }
 0x560   :  { %v2028_v21 = vpack.c.bf16 %v2019_v31, %v2018_v30  ;;  %3337 = vmatprep.subr.bf16.mxu1 %v3523_v57 }
 0x562   :  { %3295 = vmatprep.mubr.bf16.mxu1 %v2028_v21 }
 0x563   :  { %3296 = vmatmul.mubr.bf16.gmra.mrb[60].mxu1 %v2029_v1 }
 0x564   :  { %3338 = vmatpush3.bf16.msra.mxu1 %v3523_v57 }
 0x565   :  { %3339 = vmatprep.subr.bf16.mxu1 %v3524_v34 }
 0x568   :  { %3340 = vmatpush3.bf16.msra.mxu1 %v3524_v34 }
 0x569   :  { %3341 = vmatprep.subr.bf16.mxu1 %v3525_v8 }
 0x56c   :  { %3342 = vmatpush3.bf16.msra.mxu1 %v3525_v8 }
 0x56d   :  { %3343 = vmatprep.subr.bf16.mxu1 %v3526_v45 }
 0x570   :  { %3344 = vmatpush3.bf16.msra.mxu1 %v3526_v45 }
 0x571   :  { %3345 = vmatprep.subr.bf16.mxu1 %v3527_v16 }
 0x574   :  { %3346 = vmatpush3.bf16.msra.mxu1 %v3527_v16 }
 0x61e   :  { %v3285_v63 = vpop.f32.mrb[48].mxu1 }
 0x61f   :  { %v2064_v48 = vpop.f32.mrb[49].mxu1  ;;  %v3379_v39 = vadd.f32 %v3285_v63, %v4371_v9 }
 0x620   :  { %v3286_v38 = vpop.f32.mrb[50].mxu1  ;;  %v3380_v37 = vadd.f32 %v4371_v9, %v2064_v48 }
 0x621   :  { %v3381_v24 = vadd.f32 %v3286_v38, %v4371_v9  ;;  %v2067_v36 = vpop.f32.mrb[51].mxu1 }
 0x622   :  { %v3382_v58 = vadd.f32 %v4371_v9, %v2067_v36 }
 0x623   :  { %v2144_v0 = vpack.c.bf16 %v3381_v24, %v3379_v39 }
 0x624   :  { %v2143_v17 = vpack.c.bf16 %v3382_v58, %v3380_v37 }
 0x626   :  { %v3289_v12 = vpop.f32.mrb[52].mxu1  ;;  %3315 = vmatprep.mubr.bf16.mxu0 %v2143_v17 }
 0x627   :  { %v2080_v50 = vpop.f32.mrb[53].mxu1  ;;  %3316 = vmatmul.mubr.bf16.vlgmr.msra.gmra.mrb[64].mxu0 %v2144_v0  ;;  %v3383_v6 = vadd.f32 %v3289_v12, %v4371_v9 }
 0x628   :  { %v3290_v3 = vpop.f32.mrb[54].mxu1  ;;  %v3384_v54 = vadd.f32 %v4371_v9, %v2080_v50 }
 0x629   :  { %v3385_v42 = vadd.f32 %v3290_v3, %v4371_v9  ;;  %v2083_v49 = vpop.f32.mrb[55].mxu1 }
 0x62a   :  { %v3386_v19 = vadd.f32 %v4371_v9, %v2083_v49 }
 0x62b   :  { %v2146_v23 = vpack.c.bf16 %v3385_v42, %v3383_v6 }
 0x62c   :  { %v2145_v7 = vpack.c.bf16 %v3386_v19, %v3384_v54 }
 0x62e   :  { %v3293_v22 = vpop.f32.mrb[56].mxu1  ;;  %3319 = vmatprep.mubr.bf16.mxu0 %v2145_v7 }
 0x62f   :  { %v2096_v40 = vpop.f32.mrb[57].mxu1  ;;  %3320 = vmatmul.mubr.bf16.gmra.mrb[68].mxu0 %v2146_v23  ;;  %v3387_v13 = vadd.f32 %v3293_v22, %v4371_v9 }
 0x630   :  { %v3294_v15 = vpop.f32.mrb[58].mxu1  ;;  %v3388_v41 = vadd.f32 %v4371_v9, %v2096_v40 }
 0x631   :  { %v3389_v26 = vadd.f32 %v3294_v15, %v4371_v9  ;;  %v2099_v53 = vpop.f32.mrb[59].mxu1 }
 0x632   :  { %v3390_v55 = vadd.f32 %v4371_v9, %v2099_v53 }
 0x633   :  { %v2148_v25 = vpack.c.bf16 %v3389_v26, %v3387_v13 }
 0x634   :  { %v2147_v18 = vpack.c.bf16 %v3390_v55, %v3388_v41 }
 0x636   :  { %v3297_v10 = vpop.f32.mrb[60].mxu1  ;;  %3323 = vmatprep.mubr.bf16.mxu0 %v2147_v18 }
 0x637   :  { %v2112_v4 = vpop.f32.mrb[61].mxu1  ;;  %3324 = vmatmul.mubr.bf16.gmra.mrb[72].mxu0 %v2148_v25  ;;  %v3391_v52 = vadd.f32 %v3297_v10, %v4371_v9 }
 0x638   :  { %v3298_v33 = vpop.f32.mrb[62].mxu1  ;;  %v3392_v27 = vadd.f32 %v4371_v9, %v2112_v4 }
 0x639   :  { %v3393_v43 = vadd.f32 %v3298_v33, %v4371_v9  ;;  %v2115_v44 = vpop.f32.mrb[63].mxu1 }
 0x63a   :  { %v3394_v62 = vadd.f32 %v4371_v9, %v2115_v44 }
 0x63b   :  { %v2150_v47 = vpack.c.bf16 %v3393_v43, %v3391_v52 }
 0x63c   :  { %v2149_v61 = vpack.c.bf16 %v3394_v62, %v3392_v27 }
 0x63e   :  { %3327 = vmatprep.mubr.bf16.mxu0 %v2149_v61 }
 0x63f   :  { %3328 = vmatmul.mubr.bf16.gmra.mrb[76].mxu0 %v2150_v47 }
 0x6fa   :  { %v3317_v28 = vpop.f32.mrb[64].mxu0 }
 0x6fb   :  { %v2265_v9 = vadd.f32 %v3317_v28, %v4522_v5  ;;  %v2256_v29 = vpop.f32.mrb[65].mxu0 }
 0x6fc   :  { %v2257_v56 = vadd.f32 %v4522_v5, %v2256_v29  ;;  %v3318_v46 = vpop.f32.mrb[66].mxu0 }
 0x6fd   :  { %v2337_v60 = vmul.f32 0.01, %v2265_v9  ;;  %v2268_v32 = vadd.f32 %v3318_v46, %v4522_v5  ;;  %v2259_v35 = vpop.f32.mrb[67].mxu0  ;;  %vm2321_vm0 = vcmp.gt.f32.partialorder %v2265_v9, 0.0 }
 0x6fe   :  { %v2335_v11 = vmul.f32 0.01, %v2257_v56  ;;  %v2260_v30 = vadd.f32 %v4522_v5, %v2259_v35  ;;  %vm2319_vm1 = vcmp.gt.f32.partialorder %v2257_v56, 0.0 }
 0x6ff   :  { %vm2322_vm2 = vcmp.gt.f32.partialorder %v2268_v32, 0.0  ;;  %v2338_v31 = vmul.f32 0.01, %v2268_v32  ;;  %v2353_v21 = vsel %vm2321_vm0, %v2265_v9, %v2337_v60 }
 0x700   :  { %vm2320_vm3 = vcmp.gt.f32.partialorder %v2260_v30, 0.0  ;;  %v2336_v1 = vmul.f32 0.01, %v2260_v30  ;;  %v2351_v59 = vsel %vm2319_vm1, %v2257_v56, %v2335_v11 }
 0x701   :  { %v2354_v14 = vsel %vm2322_vm2, %v2268_v32, %v2338_v31 }
 0x702   :  { %v2368_v20 = vpack.c.bf16 %v2354_v14, %v2353_v21  ;;  %v3321_v51 = vpop.f32.mrb[68].mxu0  ;;  %v2352_v2 = vsel %vm2320_vm3, %v2260_v30, %v2336_v1  ;;  %v2682_v30 = vld [vmem:[%s4570_s12] ss:$0 sm:$0xff]  ;;  %s3678_s12 = smov [#allocation11]  }
 0x703   :  { %v2281_v57 = vadd.f32 %v3321_v51, %v4522_v5  ;;  %v2272_v34 = vpop.f32.mrb[69].mxu0  ;;  %v2367_v63 = vpack.c.bf16 %v2352_v2, %v2351_v59  ;;  %s2564_s2 = sshll.u32 %s3678_s12, 4  ;;  %s2565_s2 = int_to_ptr.vmem [resolvable:$true] %s2564_s2 }
 0x704   :  { %v2273_v48 = vadd.f32 %v4522_v5, %v2272_v34  ;;  %v3322_v38 = vpop.f32.mrb[70].mxu0  ;;  %s3638_s1 = scalar_lea.vmem %s2565_s2, 2048  ;;  %p3643_p13 = scmp.lt.s32.totalorder %s2565_s2, %s2565_s2 }
 0x705   :  { %v2341_v39 = vmul.f32 0.01, %v2281_v57  ;;  %v2284_v24 = vadd.f32 %v3322_v38, %v4522_v5  ;;  %v2275_v36 = vpop.f32.mrb[71].mxu0  ;;  %3347 = vmatprep.mubr.bf16.mxu1 %v2367_v63  ;;  %vm2325_vm4 = vcmp.gt.f32.partialorder %v2281_v57, 0.0  ;;  %p3639_p12 = scmp.ne.s32.totalorder %s2565_s2, %s3638_s1  ;;  %p3644_p0 = scmp.lt.s32.totalorder %s3638_s1, %s3638_s1 }
 0x706   :  { %v2339_v37 = vmul.f32 0.01, %v2273_v48  ;;  %v2276_v58 = vadd.f32 %v4522_v5, %v2275_v36  ;;  %3348 = vmatmul.mubr.bf16.vlgmr.msra.gmra.mrb[64].mxu1 %v2368_v20  ;;  %vm2323_vm5 = vcmp.gt.f32.partialorder %v2273_v48, 0.0 }
 0x707   :  { %vm2326_vm6 = vcmp.gt.f32.partialorder %v2284_v24, 0.0  ;;  %v2342_v0 = vmul.f32 0.01, %v2284_v24  ;;  %v2357_v12 = vsel %vm2325_vm4, %v2281_v57, %v2341_v39  ;;  %p3645_p1 = por %p3644_p0, %p3643_p13 }
 0x708   :  { %vm2324_vm7 = vcmp.gt.f32.partialorder %v2276_v58, 0.0  ;;  %v2340_v17 = vmul.f32 0.01, %v2276_v58  ;;  %v2355_v6 = vsel %vm2323_vm5, %v2273_v48, %v2339_v37 }
 0x709   :  { %v2358_v50 = vsel %vm2326_vm6, %v2284_v24, %v2342_v0  ;;  %p3646_p2 = pnand %p3645_p1, %p3639_p12 }
 0x70a   :  { %v3325_v3 = vpop.f32.mrb[72].mxu0  ;;  %v2356_v42 = vsel %vm2324_vm7, %v2276_v58, %v2340_v17  ;;  %v2370_v49 = vpack.c.bf16 %v2358_v50, %v2357_v12 }
 0x70b   :  { %v2297_v54 = vadd.f32 %v3325_v3, %v4522_v5  ;;  %v2288_v19 = vpop.f32.mrb[73].mxu0  ;;  %v2369_v23 = vpack.c.bf16 %v2356_v42, %v2355_v6 }
 0x70c   :  { %v2289_v7 = vadd.f32 %v4522_v5, %v2288_v19  ;;  %v3326_v22 = vpop.f32.mrb[74].mxu0 }
 0x70d   :  { %v2345_v40 = vmul.f32 0.01, %v2297_v54  ;;  %v2300_v15 = vadd.f32 %v3326_v22, %v4522_v5  ;;  %v2291_v13 = vpop.f32.mrb[75].mxu0  ;;  %3351 = vmatprep.mubr.bf16.mxu1 %v2369_v23  ;;  %vm2329_vm8 = vcmp.gt.f32.partialorder %v2297_v54, 0.0 }
 0x70e   :  { %v2343_v26 = vmul.f32 0.01, %v2289_v7  ;;  %v2292_v53 = vadd.f32 %v4522_v5, %v2291_v13  ;;  %3352 = vmatmul.mubr.bf16.gmra.mrb[68].mxu1 %v2370_v49  ;;  %vm2327_vm9 = vcmp.gt.f32.partialorder %v2289_v7, 0.0 }
 0x70f   :  { %vm2330_vm10 = vcmp.gt.f32.partialorder %v2300_v15, 0.0  ;;  %v2346_v41 = vmul.f32 0.01, %v2300_v15  ;;  %v2361_v25 = vsel %vm2329_vm8, %v2297_v54, %v2345_v40 }
 0x710   :  { %vm2328_vm11 = vcmp.gt.f32.partialorder %v2292_v53, 0.0  ;;  %v2344_v55 = vmul.f32 0.01, %v2292_v53  ;;  %v2359_v4 = vsel %vm2327_vm9, %v2289_v7, %v2343_v26 }
 0x711   :  { %v2362_v18 = vsel %vm2330_vm10, %v2300_v15, %v2346_v41 }
 0x712   :  { %v3329_v10 = vpop.f32.mrb[76].mxu0  ;;  %v2360_v33 = vsel %vm2328_vm11, %v2292_v53, %v2344_v55  ;;  %v2372_v52 = vpack.c.bf16 %v2362_v18, %v2361_v25 }
 0x713   :  { %v2313_v43 = vadd.f32 %v3329_v10, %v4522_v5  ;;  %v2304_v44 = vpop.f32.mrb[77].mxu0  ;;  %v2371_v27 = vpack.c.bf16 %v2360_v33, %v2359_v4 }
 0x714   :  { %v2305_v62 = vadd.f32 %v4522_v5, %v2304_v44  ;;  %v3330_v47 = vpop.f32.mrb[78].mxu0 }
 0x715   :  { %v2349_v61 = vmul.f32 0.01, %v2313_v43  ;;  %v2316_v8 = vadd.f32 %v3330_v47, %v4522_v5  ;;  %v2307_v45 = vpop.f32.mrb[79].mxu0  ;;  %3355 = vmatprep.mubr.bf16.mxu1 %v2371_v27  ;;  %vm2333_vm12 = vcmp.gt.f32.partialorder %v2313_v43, 0.0 }
 0x716   :  { %v2347_v16 = vmul.f32 0.01, %v2305_v62  ;;  %v2308_v28 = vadd.f32 %v4522_v5, %v2307_v45  ;;  %3356 = vmatmul.mubr.bf16.gmra.mrb[72].mxu1 %v2372_v52  ;;  %vm2331_vm13 = vcmp.gt.f32.partialorder %v2305_v62, 0.0 }
 0x717   :  { %vm2334_vm14 = vcmp.gt.f32.partialorder %v2316_v8, 0.0  ;;  %v2350_v9 = vmul.f32 0.01, %v2316_v8  ;;  %v2365_v56 = vsel %vm2333_vm12, %v2313_v43, %v2349_v61 }
 0x718   :  { %vm2332_vm15 = vcmp.gt.f32.partialorder %v2308_v28, 0.0  ;;  %v2348_v29 = vmul.f32 0.01, %v2308_v28  ;;  %v2363_v60 = vsel %vm2331_vm13, %v2305_v62, %v2347_v16 }
 0x719   :  { %v2366_v46 = vsel %vm2334_vm14, %v2316_v8, %v2350_v9 }
 0x71a   :  { %v2364_v32 = vsel %vm2332_vm15, %v2308_v28, %v2348_v29  ;;  %v2374_v35 = vpack.c.bf16 %v2366_v46, %v2365_v56 }
 0x71b   :  { %v2373_v11 = vpack.c.bf16 %v2364_v32, %v2363_v60 }
 0x71d   :  { %3359 = vmatprep.mubr.bf16.mxu1 %v2373_v11 }
 0x71e   :  { %3360 = vmatmul.mubr.bf16.gmra.mrb[76].mxu1 %v2374_v35 }
 0x7d9   :  { %v3349_v31 = vpop.f32.mrb[64].mxu1 }
 0x7da   :  { %v2489_v5 = vadd.f32 %v3349_v31, %v2682_v30  ;;  %v2480_v1 = vpop.f32.mrb[65].mxu1 }
 0x7db   :  { %v2481_v21 = vadd.f32 %v2682_v30, %v2480_v1  ;;  %v3350_v14 = vpop.f32.mrb[66].mxu1 }
 0x7dc   :  { %2545 = vst [vmem:[#allocation11 + $0x10] sm:$0xff] %v2489_v5  ;;  %v2492_v20 = vadd.f32 %v3350_v14, %v2682_v30  ;;  %v2483_v51 = vpop.f32.mrb[67].mxu1 }
 0x7dd   :  { %2543 = vst [vmem:[#allocation11] sm:$0xff] %v2481_v21  ;;  %v2484_v59 = vadd.f32 %v2682_v30, %v2483_v51 }
 0x7de   :  { %2546 = vst [vmem:[#allocation11 + $0x18] sm:$0xff] %v2492_v20 }
 0x7df   :  { %2544 = vst [vmem:[#allocation11 + $0x8] sm:$0xff] %v2484_v59 }
 0x7e1   :  { %v3353_v2 = vpop.f32.mrb[68].mxu1 }
 0x7e2   :  { %v2505_v57 = vadd.f32 %v3353_v2, %v2682_v30  ;;  %v2496_v34 = vpop.f32.mrb[69].mxu1 }
 0x7e3   :  { %v2497_v63 = vadd.f32 %v2682_v30, %v2496_v34  ;;  %v3354_v48 = vpop.f32.mrb[70].mxu1 }
 0x7e4   :  { %2549 = vst [vmem:[#allocation11 + $0x30] sm:$0xff] %v2505_v57  ;;  %v2508_v38 = vadd.f32 %v3354_v48, %v2682_v30  ;;  %v2499_v39 = vpop.f32.mrb[71].mxu1 }
 0x7e5   :  { %2547 = vst [vmem:[#allocation11 + $0x20] sm:$0xff] %v2497_v63  ;;  %v2500_v24 = vadd.f32 %v2682_v30, %v2499_v39 }
 0x7e6   :  { %2550 = vst [vmem:[#allocation11 + $0x38] sm:$0xff] %v2508_v38 }
 0x7e7   :  { %2548 = vst [vmem:[#allocation11 + $0x28] sm:$0xff] %v2500_v24 }
 0x7e9   :  { %v3357_v36 = vpop.f32.mrb[72].mxu1 }
 0x7ea   :  { %v2521_v37 = vadd.f32 %v3357_v36, %v2682_v30  ;;  %v2512_v58 = vpop.f32.mrb[73].mxu1 }
 0x7eb   :  { %v2513_v0 = vadd.f32 %v2682_v30, %v2512_v58  ;;  %v3358_v17 = vpop.f32.mrb[74].mxu1 }
 0x7ec   :  { %2553 = vst [vmem:[#allocation11 + $0x50] sm:$0xff] %v2521_v37  ;;  %v2524_v12 = vadd.f32 %v3358_v17, %v2682_v30  ;;  %v2515_v50 = vpop.f32.mrb[75].mxu1 }
 0x7ed   :  { %2551 = vst [vmem:[#allocation11 + $0x40] sm:$0xff] %v2513_v0  ;;  %v2516_v3 = vadd.f32 %v2682_v30, %v2515_v50 }
 0x7ee   :  { %2554 = vst [vmem:[#allocation11 + $0x58] sm:$0xff] %v2524_v12 }
 0x7ef   :  { %2552 = vst [vmem:[#allocation11 + $0x48] sm:$0xff] %v2516_v3 }
 0x7f1   :  { %v3361_v6 = vpop.f32.mrb[76].mxu1 }
 0x7f2   :  { %v2537_v42 = vadd.f32 %v3361_v6, %v2682_v30  ;;  %v2528_v49 = vpop.f32.mrb[77].mxu1 }
 0x7f3   :  { %v2529_v54 = vadd.f32 %v2682_v30, %v2528_v49  ;;  %v3362_v19 = vpop.f32.mrb[78].mxu1 }
 0x7f4   :  { %2557 = vst [vmem:[#allocation11 + $0x70] sm:$0xff] %v2537_v42  ;;  %v2540_v23 = vadd.f32 %v3362_v19, %v2682_v30  ;;  %v2531_v7 = vpop.f32.mrb[79].mxu1 }
 0x7f5   :  { %2555 = vst [vmem:[#allocation11 + $0x60] sm:$0xff] %v2529_v54  ;;  %v2532_v22 = vadd.f32 %v2682_v30, %v2531_v7 }
 0x7f6   :  { %2558 = vst [vmem:[#allocation11 + $0x78] sm:$0xff] %v2540_v23 }
 0x7f7   :  { %2556 = vst [vmem:[#allocation11 + $0x68] sm:$0xff] %v2532_v22 }
 0x7f8   :  { %3649 = shalt.err (!%p3646_p2)
}
 0x7f9   :  { %s3650_s28 = scalar_lea.hbm %s4571_s13, 2048 }
 0x7fa   :  { %p3651_p3 = scmp.ne.s32.totalorder %s4571_s13, %s3650_s28  ;;  %p3654_p4 = scmp.lt.u32.totalorder %s3650_s28, %s4571_s13 }
 0x7fc   :  { %p3656_p5 = pnand %p3654_p4, %p3651_p3 }
 0x7fe   :  { %3659 = shalt.err (!%p3656_p5)
}
 0x7ff   :  { %2570 = dma.vmem_to_hbm [thread:$0]  %s2565_s2, 2048, %s4571_s13, [#allocation4], %s3673_s9, %s3673_s9, %s3674_s23  }
 0x800   :  { %3666 = dma.done.wait [#allocation4], 2048  }
 0x801   :  { %3667 = vsyncadd [#allocation4], 4294965248 }
 0x802   :  { %2574 = vsyncpa [#allocation3], 1 }
 0x803   :  { %2575 = vsyncpa [#allocation6], 1 }
 0x804   :  { %2576 = vsyncpa [#allocation9], 1 }
 0x805   :  { %2577 = vsyncpa [#allocation4], 1 }

</bundles_post_ra>
